<compile_context>
chip_gen: v6e
topology: v6e:2x2x1
jax: 0.10.0
libtpu: 0.0.40
codegen_flags: <defaults>
</compile_context>

<pallas_src>
import functools

import jax
import jax.numpy as jnp
from jax.experimental import pallas as pl
from jax.experimental.pallas import tpu as pltpu


# Architecture of the nn.Sequential: (stride, has_instance_norm, has_leaky_relu) per Conv1d.
# Channel plan: in_channels -> b -> 2b -> 4b -> 8b -> 1, kernel_size=4, padding=1 everywhere.
ARCH = (
    (2, False, True),
    (2, True, True),
    (2, True, True),
    (1, True, True),
    (1, False, False),
)
_K = 4        # Conv1d kernel size
_PAD = 1      # Conv1d padding
_EPS = 1e-5   # InstanceNorm1d eps (torch default)


def _pad_to_lanes(c):
    return 128 * max(1, -(-c // 128))


def _discriminator_kernel(x_ref, *refs, cfg, eps):
    """Fused 5-layer forward for ONE sample (grid iterates over batch).

    x_ref            : (1, L_out0, 4)  pre-gathered layer-0 taps of the scalar input channel
    refs[:nl]        : per-layer weights; layer 0: (4, cout0_p) f32, layers>0: (4, cin_p, cout_p) bf16
    refs[nl:2nl]     : per-layer (3, cout_p) f32  [row0 bias, row1 gamma, row2 beta]
    refs[2nl]        : (1, L_final, cout_last_p) f32 output block
    refs[2nl+1:]     : one (L_in + 2, cin_p) f32 VMEM buffer per layer-1..4 input (rows 0 / L_in+1
                       are the zero conv halo)
    """
    nl = len(cfg)
    w_refs = refs[:nl]
    p_refs = refs[nl:2 * nl]
    o_ref = refs[2 * nl]
    bufs = refs[2 * nl + 1:]

    # Zero the conv halo rows (padding=1 at both ends of every intermediate buffer).
    # Kept unconditional: scratch is per-core, so a program_id==0 guard would leave the second
    # TensorCore's halos uninitialised under "parallel" megacore sharding on v7x.
    for buf in bufs:
        rows, lanes = buf.shape
        zrow = jnp.zeros((1, lanes), jnp.float32)
        buf[0:1, :] = zrow
        buf[rows - 1:rows, :] = zrow

    y = None
    for l, (stride, do_norm, do_act) in enumerate(cfg):
        p = p_refs[l][...]                                    # (3, cout_p): bias / gamma / beta

        if l == 0:
            # Layer 0 (Cin=1): 4 broadcast multiply-adds on the VPU instead of a lane-padded
            # matmul; x_ref already holds the strided taps of the zero-padded input.
            x4 = x_ref[0]                                     # (l_out0, 4) f32
            w0 = w_refs[0][...]                               # (4, cout0_p) f32
            l_out = x4.shape[0]
            acc = x4[:, 0:1] * w0[0:1, :]
            for k in range(1, _K):
                acc = acc + x4[:, k:k + 1] * w0[k:k + 1, :]
        else:
            in_buf = bufs[l - 1]
            l_in = in_buf.shape[0] - 2 * _PAD
            l_out = (l_in + 2 * _PAD - _K) // stride + 1
            # Conv1d(k=4, pad=1, stride) as a sum over taps: rows {k, k+s, ...} of the halo'd
            # buffer @ W[k].  Activation taps are cast to bf16 so the matmul runs on the
            # bf16-native MXU; accumulation stays f32.
            acc = None
            for k in range(_K):
                if stride == 1:
                    xk = in_buf[pl.ds(k, l_out), :]
                else:
                    xk = in_buf[pl.ds(k, l_out, stride=stride), :]
                part = jnp.dot(xk.astype(jnp.bfloat16), w_refs[l][k],
                               preferred_element_type=jnp.float32)
                acc = part if acc is None else acc + part

        y = acc + p[0:1, :]                                   # (l_out, cout_p), f32

        if do_norm:
            # InstanceNorm1d(affine=True): per-channel stats over length, biased var,
            # single-sweep form var = E[y^2] - mean^2 (clamped for numerical safety).
            mean = jnp.mean(y, axis=0, keepdims=True)
            var = jnp.maximum(jnp.mean(y * y, axis=0, keepdims=True) - mean * mean, 0.0)
            y = (y - mean) * jax.lax.rsqrt(var + eps) * p[1:2, :] + p[2:3, :]
        if do_act:
            y = jnp.where(y >= 0.0, y, 0.2 * y)               # LeakyReLU(0.2)

        if l + 1 < nl:
            bufs[l][pl.ds(1, l_out), :] = y                   # interior of next layer's buffer
        else:
            o_ref[0] = y.astype(o_ref.dtype)


def init_discriminator_params(key, in_channels=1, base_n_filters=64):
    """Random params in PyTorch Conv1d layout: w (Cout, Cin, K), b/gamma/beta (Cout,)."""
    chans = [in_channels, base_n_filters, base_n_filters * 2,
             base_n_filters * 4, base_n_filters * 8, 1]
    params = []
    for l, (stride, do_norm, do_act) in enumerate(ARCH):
        cin, cout = chans[l], chans[l + 1]
        key, kw, kb, kg, kbe = jax.random.split(key, 5)
        params.append(dict(
            w=jax.random.normal(kw, (cout, cin, _K), jnp.float32) * 0.05,
            b=jax.random.normal(kb, (cout,), jnp.float32) * 0.01,
            gamma=1.0 + 0.1 * jax.random.normal(kg, (cout,), jnp.float32),
            beta=0.01 * jax.random.normal(kbe, (cout,), jnp.float32),
            stride=stride, do_norm=do_norm, do_act=do_act,
        ))
    return params


def pack_params(params):
    """Per-layer packing: channel dims padded to that layer's multiple of 128 lanes."""
    w_list, p_list, cfg = [], [], []
    for l, prm in enumerate(params):
        w = jnp.asarray(prm["w"], jnp.float32)                # (Cout, Cin, K) torch layout
        cout, cin, _ = w.shape
        cout_p = _pad_to_lanes(cout)
        if l == 0:
            # Cin == 1: per-tap rows for the in-kernel VPU broadcast-MAC path (kept f32).
            w0 = jnp.zeros((_K, cout_p), jnp.float32)
            w0 = w0.at[:, :cout].set(jnp.transpose(w[:, 0, :], (1, 0)))       # (K, Cout)
            w_list.append(w0)
        else:
            cin_p = _pad_to_lanes(cin)
            wl = jnp.zeros((_K, cin_p, cout_p), jnp.float32)
            wl = wl.at[:, :cin, :cout].set(jnp.transpose(w, (2, 1, 0)))       # (K, Cin, Cout)
            w_list.append(wl.astype(jnp.bfloat16))                            # bf16 MXU path
        pp = jnp.zeros((3, cout_p), jnp.float32)              # rows: bias / gamma / beta
        pp = pp.at[0, :cout].set(jnp.asarray(prm["b"], jnp.float32))
        if prm["do_norm"]:
            pp = pp.at[1, :cout].set(jnp.asarray(prm["gamma"], jnp.float32))
            pp = pp.at[2, :cout].set(jnp.asarray(prm["beta"], jnp.float32))
        p_list.append(pp)
        cfg.append((prm["stride"], prm["do_norm"], prm["do_act"]))
    return dict(w=tuple(w_list), p=tuple(p_list), cfg=tuple(cfg),
                out_channels=int(params[-1]["w"].shape[0]))


def discriminator_forward(packed, x):
    """x: (N, 1, L) float32 (torch Conv1d layout). Returns (N, 1, L_final)."""
    cfg = packed["cfg"]
    nl = len(cfg)
    n, c_in, l0 = x.shape
    assert c_in == 1

    # Per-layer output lengths (Conv1d: k=4, pad=1).
    lens, l_cur = [], l0
    for (stride, _, _) in cfg:
        l_cur = (l_cur + 2 * _PAD - _K) // stride + 1
        lens.append(l_cur)
    l_final = lens[-1]
    l_out0, s0 = lens[0], cfg[0][0]

    # Layer-0 tap gather done once in the wrapper (4 strided slices of the scalar channel).
    # Replaces the old 128x lane-padded input DMA and the in-kernel staging copy.
    xp = jnp.pad(x[:, 0, :], ((0, 0), (_PAD, _PAD)))                          # (N, L+2)
    x4 = jnp.stack([xp[:, k:k + s0 * (l_out0 - 1) + 1:s0] for k in range(_K)],
                   axis=-1)                                                   # (N, L_out0, 4)

    cout_ps = [packed["p"][l].shape[1] for l in range(nl)]

    const2 = lambda i: (0, 0)
    const3 = lambda i: (0, 0, 0)
    # Constant-index parameter refs: single-buffered (double-buffering them only burns VMEM,
    # which matters most on v7x's 64 MiB per TensorCore).
    w_specs = [pl.BlockSpec(packed["w"][l].shape,
                            const2 if packed["w"][l].ndim == 2 else const3,
                            pipeline_mode=pl.Buffered(1)) for l in range(nl)]
    p_specs = [pl.BlockSpec(packed["p"][l].shape, const2,
                            pipeline_mode=pl.Buffered(1)) for l in range(nl)]

    # One zero-halo'd f32 activation buffer per intermediate layer input (lanes = producing
    # layer's padded Cout == consuming layer's padded Cin).
    scratch = [pltpu.VMEM((lens[l] + 2 * _PAD, cout_ps[l]), jnp.float32)
               for l in range(nl - 1)]

    # Explicit VMEM budget: params + scratch + double-buffered in/out blocks, with 2x slack.
    param_bytes = sum(int(a.size) * a.dtype.itemsize
                      for a in list(packed["w"]) + list(packed["p"]))
    scratch_bytes = sum((lens[l] + 2 * _PAD) * cout_ps[l] * 4 for l in range(nl - 1))
    io_bytes = 2 * (l_out0 * _K + l_final * cout_ps[-1]) * 4
    vmem_limit = int(min(96 * 2**20,
                         max(32 * 2**20, 2 * (param_bytes + scratch_bytes + io_bytes))))

    kern = functools.partial(_discriminator_kernel, cfg=cfg, eps=_EPS)
    out = pl.pallas_call(
        kern,
        out_shape=jax.ShapeDtypeStruct((n, l_final, cout_ps[-1]), jnp.float32),
        grid_spec=pltpu.PrefetchScalarGridSpec(
            num_scalar_prefetch=0,
            # TODO(synk): block B_TILE samples per grid step to raise matmul M at real sizes
            # (keep >= 2 grid steps so both v7x TensorCores stay busy).
            grid=(n,),
            in_specs=[pl.BlockSpec((1, l_out0, _K), lambda i: (i, 0, 0))] + w_specs + p_specs,
            out_specs=pl.BlockSpec((1, l_final, cout_ps[-1]), lambda i: (i, 0, 0)),
            scratch_shapes=scratch,
        ),
        compiler_params=pltpu.CompilerParams(
            dimension_semantics=("parallel",),   # batch items independent -> megacore on v7x
            vmem_limit_bytes=vmem_limit,
        ),
    )(x4, *packed["w"], *packed["p"])

    # Final Conv1d has Cout = 1: slice the single real channel, back to (N, C, L) layout.
    # (Lane-packing the single output channel only pays off at large L_final; review #12.)
    c_out = packed["out_channels"]
    return jnp.transpose(out[:, :, :c_out], (0, 2, 1))


if __name__ == "__main__":
    key = jax.random.PRNGKey(0)
    kx, kp = jax.random.split(key)

    # Small shapes consistent with the module: (batch=2, in_channels=1, length=64), base_n_filters=16
    x = jax.random.normal(kx, (2, 1, 64), jnp.float32)
    params = init_discriminator_params(kp, in_channels=1, base_n_filters=16)
    packed = pack_params(params)

    fwd = jax.jit(functools.partial(discriminator_forward, packed))
    out = jax.block_until_ready(fwd(x))

    # L: 64 -> 32 -> 16 -> 8 -> 7 -> 6 ; final channels = 1
    assert out.shape == (2, 1, 6), out.shape
    assert bool(jnp.all(jnp.isfinite(out)))
    print("KERNEL_OK")
</pallas_src>

<mosaic_0001>
module attributes {stable_mosaic.version = 11 : i64} {
  func.func @_discriminator_kernel(%arg0: i32, %arg1: memref<1x32x4xf32, #tpu.memory_space<vmem>>, %arg2: memref<4x128xf32, #tpu.memory_space<vmem>>, %arg3: memref<4x128x128xbf16, #tpu.memory_space<vmem>>, %arg4: memref<4x128x128xbf16, #tpu.memory_space<vmem>>, %arg5: memref<4x128x128xbf16, #tpu.memory_space<vmem>>, %arg6: memref<4x128x128xbf16, #tpu.memory_space<vmem>>, %arg7: memref<3x128xf32, #tpu.memory_space<vmem>>, %arg8: memref<3x128xf32, #tpu.memory_space<vmem>>, %arg9: memref<3x128xf32, #tpu.memory_space<vmem>>, %arg10: memref<3x128xf32, #tpu.memory_space<vmem>>, %arg11: memref<3x128xf32, #tpu.memory_space<vmem>>, %arg12: memref<1x6x128xf32, #tpu.memory_space<vmem>>, %arg13: memref<34x128xf32, #tpu.memory_space<vmem>>, %arg14: memref<18x128xf32, #tpu.memory_space<vmem>>, %arg15: memref<10x128xf32, #tpu.memory_space<vmem>>, %arg16: memref<9x128xf32, #tpu.memory_space<vmem>>) attributes {dimension_semantics = [#tpu.dimension_semantics<parallel>], iteration_bounds = array<i64: 2>, scalar_prefetch = 0 : i64, scratch_operands = 4 : i64, tpu.core_type = #tpu.core_type<tc>, window_params = [{transform_indices = @transform_0, window_bounds = array<i64: 1, 32, 4>}, {pipeline_mode = #tpu.pipeline_mode<synchronous>, transform_indices = @transform_1, window_bounds = array<i64: 4, 128>}, {pipeline_mode = #tpu.pipeline_mode<synchronous>, transform_indices = @transform_2, window_bounds = array<i64: 4, 128, 128>}, {pipeline_mode = #tpu.pipeline_mode<synchronous>, transform_indices = @transform_3, window_bounds = array<i64: 4, 128, 128>}, {pipeline_mode = #tpu.pipeline_mode<synchronous>, transform_indices = @transform_4, window_bounds = array<i64: 4, 128, 128>}, {pipeline_mode = #tpu.pipeline_mode<synchronous>, transform_indices = @transform_5, window_bounds = array<i64: 4, 128, 128>}, {pipeline_mode = #tpu.pipeline_mode<synchronous>, transform_indices = @transform_6, window_bounds = array<i64: 3, 128>}, {pipeline_mode = #tpu.pipeline_mode<synchronous>, transform_indices = @transform_7, window_bounds = array<i64: 3, 128>}, {pipeline_mode = #tpu.pipeline_mode<synchronous>, transform_indices = @transform_8, window_bounds = array<i64: 3, 128>}, {pipeline_mode = #tpu.pipeline_mode<synchronous>, transform_indices = @transform_9, window_bounds = array<i64: 3, 128>}, {pipeline_mode = #tpu.pipeline_mode<synchronous>, transform_indices = @transform_10, window_bounds = array<i64: 3, 128>}, {transform_indices = @transform_11, window_bounds = array<i64: 1, 6, 128>}]} {
    %cst = arith.constant 0.000000e+00 : f32
    %0 = vector.broadcast %cst : f32 to vector<1x128xf32>
    %c0 = arith.constant 0 : index
    %c0_0 = arith.constant 0 : index
    %1 = vector.load %arg13[%c0, %c0_0] : memref<34x128xf32, #tpu.memory_space<vmem>>, vector<1x128xf32>
    tpu.vector_store %arg13[%c0, %c0_0], %0 {strides = array<i32>} : memref<34x128xf32, #tpu.memory_space<vmem>>, vector<1x128xf32>,
    %c33 = arith.constant 33 : index
    %c0_1 = arith.constant 0 : index
    %2 = vector.load %arg13[%c33, %c0_1] : memref<34x128xf32, #tpu.memory_space<vmem>>, vector<1x128xf32>
    tpu.vector_store %arg13[%c33, %c0_1], %0 {strides = array<i32>} : memref<34x128xf32, #tpu.memory_space<vmem>>, vector<1x128xf32>,
    %cst_2 = arith.constant 0.000000e+00 : f32
    %3 = vector.broadcast %cst_2 : f32 to vector<1x128xf32>
    %c0_3 = arith.constant 0 : index
    %c0_4 = arith.constant 0 : index
    %4 = vector.load %arg14[%c0_3, %c0_4] : memref<18x128xf32, #tpu.memory_space<vmem>>, vector<1x128xf32>
    tpu.vector_store %arg14[%c0_3, %c0_4], %3 {strides = array<i32>} : memref<18x128xf32, #tpu.memory_space<vmem>>, vector<1x128xf32>,
    %c17 = arith.constant 17 : index
    %c0_5 = arith.constant 0 : index
    %5 = vector.load %arg14[%c17, %c0_5] : memref<18x128xf32, #tpu.memory_space<vmem>>, vector<1x128xf32>
    tpu.vector_store %arg14[%c17, %c0_5], %3 {strides = array<i32>} : memref<18x128xf32, #tpu.memory_space<vmem>>, vector<1x128xf32>,
    %cst_6 = arith.constant 0.000000e+00 : f32
    %6 = vector.broadcast %cst_6 : f32 to vector<1x128xf32>
    %c0_7 = arith.constant 0 : index
    %c0_8 = arith.constant 0 : index
    %7 = vector.load %arg15[%c0_7, %c0_8] : memref<10x128xf32, #tpu.memory_space<vmem>>, vector<1x128xf32>
    tpu.vector_store %arg15[%c0_7, %c0_8], %6 {strides = array<i32>} : memref<10x128xf32, #tpu.memory_space<vmem>>, vector<1x128xf32>,
    %c9 = arith.constant 9 : index
    %c0_9 = arith.constant 0 : index
    %8 = vector.load %arg15[%c9, %c0_9] : memref<10x128xf32, #tpu.memory_space<vmem>>, vector<1x128xf32>
    tpu.vector_store %arg15[%c9, %c0_9], %6 {strides = array<i32>} : memref<10x128xf32, #tpu.memory_space<vmem>>, vector<1x128xf32>,
    %cst_10 = arith.constant 0.000000e+00 : f32
    %9 = vector.broadcast %cst_10 : f32 to vector<1x128xf32>
    %c0_11 = arith.constant 0 : index
    %c0_12 = arith.constant 0 : index
    %10 = vector.load %arg16[%c0_11, %c0_12] : memref<9x128xf32, #tpu.memory_space<vmem>>, vector<1x128xf32>
    tpu.vector_store %arg16[%c0_11, %c0_12], %9 {strides = array<i32>} : memref<9x128xf32, #tpu.memory_space<vmem>>, vector<1x128xf32>,
    %c8 = arith.constant 8 : index
    %c0_13 = arith.constant 0 : index
    %11 = vector.load %arg16[%c8, %c0_13] : memref<9x128xf32, #tpu.memory_space<vmem>>, vector<1x128xf32>
    tpu.vector_store %arg16[%c8, %c0_13], %9 {strides = array<i32>} : memref<9x128xf32, #tpu.memory_space<vmem>>, vector<1x128xf32>,
    %c0_14 = arith.constant 0 : index
    %c0_15 = arith.constant 0 : index
    %12 = vector.load %arg7[%c0_14, %c0_15] : memref<3x128xf32, #tpu.memory_space<vmem>>, vector<3x128xf32>
    %c0_16 = arith.constant 0 : index
    %c0_17 = arith.constant 0 : index
    %c0_18 = arith.constant 0 : index
    %13 = vector.load %arg1[%c0_16, %c0_17, %c0_18] : memref<1x32x4xf32, #tpu.memory_space<vmem>>, vector<1x32x4xf32>
    %14 = vector.shape_cast %13 : vector<1x32x4xf32> to vector<32x4xf32>
    %c0_19 = arith.constant 0 : index
    %c0_20 = arith.constant 0 : index
    %15 = vector.load %arg2[%c0_19, %c0_20] : memref<4x128xf32, #tpu.memory_space<vmem>>, vector<4x128xf32>
    %16 = vector.extract_strided_slice %14 {offsets = [0, 0], sizes = [32, 1], strides = [1, 1]} : vector<32x4xf32> to vector<32x1xf32>
    %17 = vector.extract_strided_slice %15 {offsets = [0, 0], sizes = [1, 128], strides = [1, 1]} : vector<4x128xf32> to vector<1x128xf32>
    %18 = vector.broadcast %16 : vector<32x1xf32> to vector<32x128xf32>
    %19 = vector.broadcast %17 : vector<1x128xf32> to vector<32x128xf32>
    %20 = arith.mulf %18, %19 : vector<32x128xf32>
    %21 = vector.extract_strided_slice %14 {offsets = [0, 1], sizes = [32, 1], strides = [1, 1]} : vector<32x4xf32> to vector<32x1xf32>
    %22 = vector.extract_strided_slice %15 {offsets = [1, 0], sizes = [1, 128], strides = [1, 1]} : vector<4x128xf32> to vector<1x128xf32>
    %23 = vector.broadcast %21 : vector<32x1xf32> to vector<32x128xf32>
    %24 = vector.broadcast %22 : vector<1x128xf32> to vector<32x128xf32>
    %25 = arith.mulf %23, %24 : vector<32x128xf32>
    %26 = arith.addf %20, %25 : vector<32x128xf32>
    %27 = vector.extract_strided_slice %14 {offsets = [0, 2], sizes = [32, 1], strides = [1, 1]} : vector<32x4xf32> to vector<32x1xf32>
    %28 = vector.extract_strided_slice %15 {offsets = [2, 0], sizes = [1, 128], strides = [1, 1]} : vector<4x128xf32> to vector<1x128xf32>
    %29 = vector.broadcast %27 : vector<32x1xf32> to vector<32x128xf32>
    %30 = vector.broadcast %28 : vector<1x128xf32> to vector<32x128xf32>
    %31 = arith.mulf %29, %30 : vector<32x128xf32>
    %32 = arith.addf %26, %31 : vector<32x128xf32>
    %33 = vector.extract_strided_slice %14 {offsets = [0, 3], sizes = [32, 1], strides = [1, 1]} : vector<32x4xf32> to vector<32x1xf32>
    %34 = vector.extract_strided_slice %15 {offsets = [3, 0], sizes = [1, 128], strides = [1, 1]} : vector<4x128xf32> to vector<1x128xf32>
    %35 = vector.broadcast %33 : vector<32x1xf32> to vector<32x128xf32>
    %36 = vector.broadcast %34 : vector<1x128xf32> to vector<32x128xf32>
    %37 = arith.mulf %35, %36 : vector<32x128xf32>
    %38 = arith.addf %32, %37 : vector<32x128xf32>
    %39 = vector.extract_strided_slice %12 {offsets = [0, 0], sizes = [1, 128], strides = [1, 1]} : vector<3x128xf32> to vector<1x128xf32>
    %40 = vector.broadcast %39 : vector<1x128xf32> to vector<32x128xf32>
    %41 = arith.addf %38, %40 : vector<32x128xf32>
    %cst_21 = arith.constant 0.000000e+00 : f32
    %42 = vector.broadcast %cst_21 : f32 to vector<32x128xf32>
    %43 = arith.cmpf oge, %41, %42 : vector<32x128xf32>
    %cst_22 = arith.constant 2.000000e-01 : f32
    %44 = vector.broadcast %cst_22 : f32 to vector<32x128xf32>
    %45 = arith.mulf %44, %41 : vector<32x128xf32>
    %46 = arith.select %43, %41, %45 : vector<32x128xi1>, vector<32x128xf32>
    %c1 = arith.constant 1 : index
    %c0_23 = arith.constant 0 : index
    %47 = vector.load %arg13[%c1, %c0_23] : memref<34x128xf32, #tpu.memory_space<vmem>>, vector<32x128xf32>
    tpu.vector_store %arg13[%c1, %c0_23], %46 {strides = array<i32>} : memref<34x128xf32, #tpu.memory_space<vmem>>, vector<32x128xf32>,
    %c0_24 = arith.constant 0 : index
    %c0_25 = arith.constant 0 : index
    %48 = vector.load %arg8[%c0_24, %c0_25] : memref<3x128xf32, #tpu.memory_space<vmem>>, vector<3x128xf32>
    %c0_26 = arith.constant 0 : index
    %c0_27 = arith.constant 0 : index
    %49 = tpu.strided_load %arg13[%c0_26, %c0_27] {strides = array<i32: 2, 1>} : memref<34x128xf32, #tpu.memory_space<vmem>>, vector<16x128xf32>
    %50 = arith.truncf %49 : vector<16x128xf32> to vector<16x128xbf16>
    %c0_28 = arith.constant 0 : index
    %c0_29 = arith.constant 0 : index
    %c0_30 = arith.constant 0 : index
    %51 = vector.load %arg3[%c0_28, %c0_29, %c0_30] : memref<4x128x128xbf16, #tpu.memory_space<vmem>>, vector<1x128x128xbf16>
    %52 = vector.shape_cast %51 : vector<1x128x128xbf16> to vector<128x128xbf16>
    %cst_31 = arith.constant dense<0.000000e+00> : vector<16x128xf32>
    %53 = tpu.matmul %50, %52, %cst_31 {dimension_numbers = #tpu.dot_dimension_numbers<[1], [0], [0], [1], [0, 0, 1, 1], [], []>} : vector<16x128xbf16>, vector<128x128xbf16>, vector<16x128xf32> -> vector<16x128xf32>
    %c1_32 = arith.constant 1 : index
    %c0_33 = arith.constant 0 : index
    %54 = tpu.strided_load %arg13[%c1_32, %c0_33] {strides = array<i32: 2, 1>} : memref<34x128xf32, #tpu.memory_space<vmem>>, vector<16x128xf32>
    %55 = arith.truncf %54 : vector<16x128xf32> to vector<16x128xbf16>
    %c1_34 = arith.constant 1 : index
    %c0_35 = arith.constant 0 : index
    %c0_36 = arith.constant 0 : index
    %56 = vector.load %arg3[%c1_34, %c0_35, %c0_36] : memref<4x128x128xbf16, #tpu.memory_space<vmem>>, vector<1x128x128xbf16>
    %57 = vector.shape_cast %56 : vector<1x128x128xbf16> to vector<128x128xbf16>
    %cst_37 = arith.constant dense<0.000000e+00> : vector<16x128xf32>
    %58 = tpu.matmul %55, %57, %cst_37 {dimension_numbers = #tpu.dot_dimension_numbers<[1], [0], [0], [1], [0, 0, 1, 1], [], []>} : vector<16x128xbf16>, vector<128x128xbf16>, vector<16x128xf32> -> vector<16x128xf32>
    %59 = arith.addf %53, %58 : vector<16x128xf32>
    %c2 = arith.constant 2 : index
    %c0_38 = arith.constant 0 : index
    %60 = tpu.strided_load %arg13[%c2, %c0_38] {strides = array<i32: 2, 1>} : memref<34x128xf32, #tpu.memory_space<vmem>>, vector<16x128xf32>
    %61 = arith.truncf %60 : vector<16x128xf32> to vector<16x128xbf16>
    %c2_39 = arith.constant 2 : index
    %c0_40 = arith.constant 0 : index
    %c0_41 = arith.constant 0 : index
    %62 = vector.load %arg3[%c2_39, %c0_40, %c0_41] : memref<4x128x128xbf16, #tpu.memory_space<vmem>>, vector<1x128x128xbf16>
    %63 = vector.shape_cast %62 : vector<1x128x128xbf16> to vector<128x128xbf16>
    %cst_42 = arith.constant dense<0.000000e+00> : vector<16x128xf32>
    %64 = tpu.matmul %61, %63, %cst_42 {dimension_numbers = #tpu.dot_dimension_numbers<[1], [0], [0], [1], [0, 0, 1, 1], [], []>} : vector<16x128xbf16>, vector<128x128xbf16>, vector<16x128xf32> -> vector<16x128xf32>
    %65 = arith.addf %59, %64 : vector<16x128xf32>
    %c3 = arith.constant 3 : index
    %c0_43 = arith.constant 0 : index
    %66 = tpu.strided_load %arg13[%c3, %c0_43] {strides = array<i32: 2, 1>} : memref<34x128xf32, #tpu.memory_space<vmem>>, vector<16x128xf32>
    %67 = arith.truncf %66 : vector<16x128xf32> to vector<16x128xbf16>
    %c3_44 = arith.constant 3 : index
    %c0_45 = arith.constant 0 : index
    %c0_46 = arith.constant 0 : index
    %68 = vector.load %arg3[%c3_44, %c0_45, %c0_46] : memref<4x128x128xbf16, #tpu.memory_space<vmem>>, vector<1x128x128xbf16>
    %69 = vector.shape_cast %68 : vector<1x128x128xbf16> to vector<128x128xbf16>
    %cst_47 = arith.constant dense<0.000000e+00> : vector<16x128xf32>
    %70 = tpu.matmul %67, %69, %cst_47 {dimension_numbers = #tpu.dot_dimension_numbers<[1], [0], [0], [1], [0, 0, 1, 1], [], []>} : vector<16x128xbf16>, vector<128x128xbf16>, vector<16x128xf32> -> vector<16x128xf32>
    %71 = arith.addf %65, %70 : vector<16x128xf32>
    %72 = vector.extract_strided_slice %48 {offsets = [0, 0], sizes = [1, 128], strides = [1, 1]} : vector<3x128xf32> to vector<1x128xf32>
    %73 = vector.broadcast %72 : vector<1x128xf32> to vector<16x128xf32>
    %74 = arith.addf %71, %73 : vector<16x128xf32>
    %cst_48 = arith.constant dense<0.000000e+00> : vector<128xf32>
    %75 = vector.multi_reduction <add>, %74, %cst_48 [0] : vector<16x128xf32> to vector<128xf32>
    %76 = vector.shape_cast %75 : vector<128xf32> to vector<1x128xf32>
    %cst_49 = arith.constant 1.600000e+01 : f32
    %77 = vector.broadcast %cst_49 : f32 to vector<1x128xf32>
    %78 = arith.divf %76, %77 : vector<1x128xf32>
    %79 = arith.mulf %74, %74 : vector<16x128xf32>
    %cst_50 = arith.constant dense<0.000000e+00> : vector<128xf32>
    %80 = vector.multi_reduction <add>, %79, %cst_50 [0] : vector<16x128xf32> to vector<128xf32>
    %81 = vector.shape_cast %80 : vector<128xf32> to vector<1x128xf32>
    %cst_51 = arith.constant 1.600000e+01 : f32
    %82 = vector.broadcast %cst_51 : f32 to vector<1x128xf32>
    %83 = arith.divf %81, %82 : vector<1x128xf32>
    %84 = arith.mulf %78, %78 : vector<1x128xf32>
    %85 = arith.subf %83, %84 : vector<1x128xf32>
    %cst_52 = arith.constant 0.000000e+00 : f32
    %86 = vector.broadcast %cst_52 : f32 to vector<1x128xf32>
    %87 = arith.maximumf %85, %86 : vector<1x128xf32>
    %88 = vector.broadcast %78 : vector<1x128xf32> to vector<16x128xf32>
    %89 = arith.subf %74, %88 : vector<16x128xf32>
    %cst_53 = arith.constant 9.99999974E-6 : f32
    %90 = vector.broadcast %cst_53 : f32 to vector<1x128xf32>
    %91 = arith.addf %87, %90 : vector<1x128xf32>
    %92 = math.rsqrt %91 : vector<1x128xf32>
    %93 = vector.broadcast %92 : vector<1x128xf32> to vector<16x128xf32>
    %94 = arith.mulf %89, %93 : vector<16x128xf32>
    %95 = vector.extract_strided_slice %48 {offsets = [1, 0], sizes = [1, 128], strides = [1, 1]} : vector<3x128xf32> to vector<1x128xf32>
    %96 = vector.broadcast %95 : vector<1x128xf32> to vector<16x128xf32>
    %97 = arith.mulf %94, %96 : vector<16x128xf32>
    %98 = vector.extract_strided_slice %48 {offsets = [2, 0], sizes = [1, 128], strides = [1, 1]} : vector<3x128xf32> to vector<1x128xf32>
    %99 = vector.broadcast %98 : vector<1x128xf32> to vector<16x128xf32>
    %100 = arith.addf %97, %99 : vector<16x128xf32>
    %cst_54 = arith.constant 0.000000e+00 : f32
    %101 = vector.broadcast %cst_54 : f32 to vector<16x128xf32>
    %102 = arith.cmpf oge, %100, %101 : vector<16x128xf32>
    %cst_55 = arith.constant 2.000000e-01 : f32
    %103 = vector.broadcast %cst_55 : f32 to vector<16x128xf32>
    %104 = arith.mulf %103, %100 : vector<16x128xf32>
    %105 = arith.select %102, %100, %104 : vector<16x128xi1>, vector<16x128xf32>
    %c1_56 = arith.constant 1 : index
    %c0_57 = arith.constant 0 : index
    %106 = vector.load %arg14[%c1_56, %c0_57] : memref<18x128xf32, #tpu.memory_space<vmem>>, vector<16x128xf32>
    tpu.vector_store %arg14[%c1_56, %c0_57], %105 {strides = array<i32>} : memref<18x128xf32, #tpu.memory_space<vmem>>, vector<16x128xf32>,
    %c0_58 = arith.constant 0 : index
    %c0_59 = arith.constant 0 : index
    %107 = vector.load %arg9[%c0_58, %c0_59] : memref<3x128xf32, #tpu.memory_space<vmem>>, vector<3x128xf32>
    %c0_60 = arith.constant 0 : index
    %c0_61 = arith.constant 0 : index
    %108 = tpu.strided_load %arg14[%c0_60, %c0_61] {strides = array<i32: 2, 1>} : memref<18x128xf32, #tpu.memory_space<vmem>>, vector<8x128xf32>
    %109 = arith.truncf %108 : vector<8x128xf32> to vector<8x128xbf16>
    %c0_62 = arith.constant 0 : index
    %c0_63 = arith.constant 0 : index
    %c0_64 = arith.constant 0 : index
    %110 = vector.load %arg4[%c0_62, %c0_63, %c0_64] : memref<4x128x128xbf16, #tpu.memory_space<vmem>>, vector<1x128x128xbf16>
    %111 = vector.shape_cast %110 : vector<1x128x128xbf16> to vector<128x128xbf16>
    %cst_65 = arith.constant dense<0.000000e+00> : vector<8x128xf32>
    %112 = tpu.matmul %109, %111, %cst_65 {dimension_numbers = #tpu.dot_dimension_numbers<[1], [0], [0], [1], [0, 0, 1, 1], [], []>} : vector<8x128xbf16>, vector<128x128xbf16>, vector<8x128xf32> -> vector<8x128xf32>
    %c1_66 = arith.constant 1 : index
    %c0_67 = arith.constant 0 : index
    %113 = tpu.strided_load %arg14[%c1_66, %c0_67] {strides = array<i32: 2, 1>} : memref<18x128xf32, #tpu.memory_space<vmem>>, vector<8x128xf32>
    %114 = arith.truncf %113 : vector<8x128xf32> to vector<8x128xbf16>
    %c1_68 = arith.constant 1 : index
    %c0_69 = arith.constant 0 : index
    %c0_70 = arith.constant 0 : index
    %115 = vector.load %arg4[%c1_68, %c0_69, %c0_70] : memref<4x128x128xbf16, #tpu.memory_space<vmem>>, vector<1x128x128xbf16>
    %116 = vector.shape_cast %115 : vector<1x128x128xbf16> to vector<128x128xbf16>
    %cst_71 = arith.constant dense<0.000000e+00> : vector<8x128xf32>
    %117 = tpu.matmul %114, %116, %cst_71 {dimension_numbers = #tpu.dot_dimension_numbers<[1], [0], [0], [1], [0, 0, 1, 1], [], []>} : vector<8x128xbf16>, vector<128x128xbf16>, vector<8x128xf32> -> vector<8x128xf32>
    %118 = arith.addf %112, %117 : vector<8x128xf32>
    %c2_72 = arith.constant 2 : index
    %c0_73 = arith.constant 0 : index
    %119 = tpu.strided_load %arg14[%c2_72, %c0_73] {strides = array<i32: 2, 1>} : memref<18x128xf32, #tpu.memory_space<vmem>>, vector<8x128xf32>
    %120 = arith.truncf %119 : vector<8x128xf32> to vector<8x128xbf16>
    %c2_74 = arith.constant 2 : index
    %c0_75 = arith.constant 0 : index
    %c0_76 = arith.constant 0 : index
    %121 = vector.load %arg4[%c2_74, %c0_75, %c0_76] : memref<4x128x128xbf16, #tpu.memory_space<vmem>>, vector<1x128x128xbf16>
    %122 = vector.shape_cast %121 : vector<1x128x128xbf16> to vector<128x128xbf16>
    %cst_77 = arith.constant dense<0.000000e+00> : vector<8x128xf32>
    %123 = tpu.matmul %120, %122, %cst_77 {dimension_numbers = #tpu.dot_dimension_numbers<[1], [0], [0], [1], [0, 0, 1, 1], [], []>} : vector<8x128xbf16>, vector<128x128xbf16>, vector<8x128xf32> -> vector<8x128xf32>
    %124 = arith.addf %118, %123 : vector<8x128xf32>
    %c3_78 = arith.constant 3 : index
    %c0_79 = arith.constant 0 : index
    %125 = tpu.strided_load %arg14[%c3_78, %c0_79] {strides = array<i32: 2, 1>} : memref<18x128xf32, #tpu.memory_space<vmem>>, vector<8x128xf32>
    %126 = arith.truncf %125 : vector<8x128xf32> to vector<8x128xbf16>
    %c3_80 = arith.constant 3 : index
    %c0_81 = arith.constant 0 : index
    %c0_82 = arith.constant 0 : index
    %127 = vector.load %arg4[%c3_80, %c0_81, %c0_82] : memref<4x128x128xbf16, #tpu.memory_space<vmem>>, vector<1x128x128xbf16>
    %128 = vector.shape_cast %127 : vector<1x128x128xbf16> to vector<128x128xbf16>
    %cst_83 = arith.constant dense<0.000000e+00> : vector<8x128xf32>
    %129 = tpu.matmul %126, %128, %cst_83 {dimension_numbers = #tpu.dot_dimension_numbers<[1], [0], [0], [1], [0, 0, 1, 1], [], []>} : vector<8x128xbf16>, vector<128x128xbf16>, vector<8x128xf32> -> vector<8x128xf32>
    %130 = arith.addf %124, %129 : vector<8x128xf32>
    %131 = vector.extract_strided_slice %107 {offsets = [0, 0], sizes = [1, 128], strides = [1, 1]} : vector<3x128xf32> to vector<1x128xf32>
    %132 = vector.broadcast %131 : vector<1x128xf32> to vector<8x128xf32>
    %133 = arith.addf %130, %132 : vector<8x128xf32>
    %cst_84 = arith.constant dense<0.000000e+00> : vector<128xf32>
    %134 = vector.multi_reduction <add>, %133, %cst_84 [0] : vector<8x128xf32> to vector<128xf32>
    %135 = vector.shape_cast %134 : vector<128xf32> to vector<1x128xf32>
    %cst_85 = arith.constant 8.000000e+00 : f32
    %136 = vector.broadcast %cst_85 : f32 to vector<1x128xf32>
    %137 = arith.divf %135, %136 : vector<1x128xf32>
    %138 = arith.mulf %133, %133 : vector<8x128xf32>
    %cst_86 = arith.constant dense<0.000000e+00> : vector<128xf32>
    %139 = vector.multi_reduction <add>, %138, %cst_86 [0] : vector<8x128xf32> to vector<128xf32>
    %140 = vector.shape_cast %139 : vector<128xf32> to vector<1x128xf32>
    %cst_87 = arith.constant 8.000000e+00 : f32
    %141 = vector.broadcast %cst_87 : f32 to vector<1x128xf32>
    %142 = arith.divf %140, %141 : vector<1x128xf32>
    %143 = arith.mulf %137, %137 : vector<1x128xf32>
    %144 = arith.subf %142, %143 : vector<1x128xf32>
    %cst_88 = arith.constant 0.000000e+00 : f32
    %145 = vector.broadcast %cst_88 : f32 to vector<1x128xf32>
    %146 = arith.maximumf %144, %145 : vector<1x128xf32>
    %147 = vector.broadcast %137 : vector<1x128xf32> to vector<8x128xf32>
    %148 = arith.subf %133, %147 : vector<8x128xf32>
    %cst_89 = arith.constant 9.99999974E-6 : f32
    %149 = vector.broadcast %cst_89 : f32 to vector<1x128xf32>
    %150 = arith.addf %146, %149 : vector<1x128xf32>
    %151 = math.rsqrt %150 : vector<1x128xf32>
    %152 = vector.broadcast %151 : vector<1x128xf32> to vector<8x128xf32>
    %153 = arith.mulf %148, %152 : vector<8x128xf32>
    %154 = vector.extract_strided_slice %107 {offsets = [1, 0], sizes = [1, 128], strides = [1, 1]} : vector<3x128xf32> to vector<1x128xf32>
    %155 = vector.broadcast %154 : vector<1x128xf32> to vector<8x128xf32>
    %156 = arith.mulf %153, %155 : vector<8x128xf32>
    %157 = vector.extract_strided_slice %107 {offsets = [2, 0], sizes = [1, 128], strides = [1, 1]} : vector<3x128xf32> to vector<1x128xf32>
    %158 = vector.broadcast %157 : vector<1x128xf32> to vector<8x128xf32>
    %159 = arith.addf %156, %158 : vector<8x128xf32>
    %cst_90 = arith.constant 0.000000e+00 : f32
    %160 = vector.broadcast %cst_90 : f32 to vector<8x128xf32>
    %161 = arith.cmpf oge, %159, %160 : vector<8x128xf32>
    %cst_91 = arith.constant 2.000000e-01 : f32
    %162 = vector.broadcast %cst_91 : f32 to vector<8x128xf32>
    %163 = arith.mulf %162, %159 : vector<8x128xf32>
    %164 = arith.select %161, %159, %163 : vector<8x128xi1>, vector<8x128xf32>
    %c1_92 = arith.constant 1 : index
    %c0_93 = arith.constant 0 : index
    %165 = vector.load %arg15[%c1_92, %c0_93] : memref<10x128xf32, #tpu.memory_space<vmem>>, vector<8x128xf32>
    tpu.vector_store %arg15[%c1_92, %c0_93], %164 {strides = array<i32>} : memref<10x128xf32, #tpu.memory_space<vmem>>, vector<8x128xf32>,
    %c0_94 = arith.constant 0 : index
    %c0_95 = arith.constant 0 : index
    %166 = vector.load %arg10[%c0_94, %c0_95] : memref<3x128xf32, #tpu.memory_space<vmem>>, vector<3x128xf32>
    %c0_96 = arith.constant 0 : index
    %c0_97 = arith.constant 0 : index
    %167 = vector.load %arg15[%c0_96, %c0_97] : memref<10x128xf32, #tpu.memory_space<vmem>>, vector<7x128xf32>
    %168 = arith.truncf %167 : vector<7x128xf32> to vector<7x128xbf16>
    %c0_98 = arith.constant 0 : index
    %c0_99 = arith.constant 0 : index
    %c0_100 = arith.constant 0 : index
    %169 = vector.load %arg5[%c0_98, %c0_99, %c0_100] : memref<4x128x128xbf16, #tpu.memory_space<vmem>>, vector<1x128x128xbf16>
    %170 = vector.shape_cast %169 : vector<1x128x128xbf16> to vector<128x128xbf16>
    %cst_101 = arith.constant dense<0.000000e+00> : vector<7x128xf32>
    %171 = tpu.matmul %168, %170, %cst_101 {dimension_numbers = #tpu.dot_dimension_numbers<[1], [0], [0], [1], [0, 0, 1, 1], [], []>} : vector<7x128xbf16>, vector<128x128xbf16>, vector<7x128xf32> -> vector<7x128xf32>
    %c1_102 = arith.constant 1 : index
    %c0_103 = arith.constant 0 : index
    %172 = vector.load %arg15[%c1_102, %c0_103] : memref<10x128xf32, #tpu.memory_space<vmem>>, vector<7x128xf32>
    %173 = arith.truncf %172 : vector<7x128xf32> to vector<7x128xbf16>
    %c1_104 = arith.constant 1 : index
    %c0_105 = arith.constant 0 : index
    %c0_106 = arith.constant 0 : index
    %174 = vector.load %arg5[%c1_104, %c0_105, %c0_106] : memref<4x128x128xbf16, #tpu.memory_space<vmem>>, vector<1x128x128xbf16>
    %175 = vector.shape_cast %174 : vector<1x128x128xbf16> to vector<128x128xbf16>
    %cst_107 = arith.constant dense<0.000000e+00> : vector<7x128xf32>
    %176 = tpu.matmul %173, %175, %cst_107 {dimension_numbers = #tpu.dot_dimension_numbers<[1], [0], [0], [1], [0, 0, 1, 1], [], []>} : vector<7x128xbf16>, vector<128x128xbf16>, vector<7x128xf32> -> vector<7x128xf32>
    %177 = arith.addf %171, %176 : vector<7x128xf32>
    %c2_108 = arith.constant 2 : index
    %c0_109 = arith.constant 0 : index
    %178 = vector.load %arg15[%c2_108, %c0_109] : memref<10x128xf32, #tpu.memory_space<vmem>>, vector<7x128xf32>
    %179 = arith.truncf %178 : vector<7x128xf32> to vector<7x128xbf16>
    %c2_110 = arith.constant 2 : index
    %c0_111 = arith.constant 0 : index
    %c0_112 = arith.constant 0 : index
    %180 = vector.load %arg5[%c2_110, %c0_111, %c0_112] : memref<4x128x128xbf16, #tpu.memory_space<vmem>>, vector<1x128x128xbf16>
    %181 = vector.shape_cast %180 : vector<1x128x128xbf16> to vector<128x128xbf16>
    %cst_113 = arith.constant dense<0.000000e+00> : vector<7x128xf32>
    %182 = tpu.matmul %179, %181, %cst_113 {dimension_numbers = #tpu.dot_dimension_numbers<[1], [0], [0], [1], [0, 0, 1, 1], [], []>} : vector<7x128xbf16>, vector<128x128xbf16>, vector<7x128xf32> -> vector<7x128xf32>
    %183 = arith.addf %177, %182 : vector<7x128xf32>
    %c3_114 = arith.constant 3 : index
    %c0_115 = arith.constant 0 : index
    %184 = vector.load %arg15[%c3_114, %c0_115] : memref<10x128xf32, #tpu.memory_space<vmem>>, vector<7x128xf32>
    %185 = arith.truncf %184 : vector<7x128xf32> to vector<7x128xbf16>
    %c3_116 = arith.constant 3 : index
    %c0_117 = arith.constant 0 : index
    %c0_118 = arith.constant 0 : index
    %186 = vector.load %arg5[%c3_116, %c0_117, %c0_118] : memref<4x128x128xbf16, #tpu.memory_space<vmem>>, vector<1x128x128xbf16>
    %187 = vector.shape_cast %186 : vector<1x128x128xbf16> to vector<128x128xbf16>
    %cst_119 = arith.constant dense<0.000000e+00> : vector<7x128xf32>
    %188 = tpu.matmul %185, %187, %cst_119 {dimension_numbers = #tpu.dot_dimension_numbers<[1], [0], [0], [1], [0, 0, 1, 1], [], []>} : vector<7x128xbf16>, vector<128x128xbf16>, vector<7x128xf32> -> vector<7x128xf32>
    %189 = arith.addf %183, %188 : vector<7x128xf32>
    %190 = vector.extract_strided_slice %166 {offsets = [0, 0], sizes = [1, 128], strides = [1, 1]} : vector<3x128xf32> to vector<1x128xf32>
    %191 = vector.broadcast %190 : vector<1x128xf32> to vector<7x128xf32>
    %192 = arith.addf %189, %191 : vector<7x128xf32>
    %cst_120 = arith.constant dense<0.000000e+00> : vector<128xf32>
    %193 = vector.multi_reduction <add>, %192, %cst_120 [0] : vector<7x128xf32> to vector<128xf32>
    %194 = vector.shape_cast %193 : vector<128xf32> to vector<1x128xf32>
    %cst_121 = arith.constant 7.000000e+00 : f32
    %195 = vector.broadcast %cst_121 : f32 to vector<1x128xf32>
    %196 = arith.divf %194, %195 : vector<1x128xf32>
    %197 = arith.mulf %192, %192 : vector<7x128xf32>
    %cst_122 = arith.constant dense<0.000000e+00> : vector<128xf32>
    %198 = vector.multi_reduction <add>, %197, %cst_122 [0] : vector<7x128xf32> to vector<128xf32>
    %199 = vector.shape_cast %198 : vector<128xf32> to vector<1x128xf32>
    %cst_123 = arith.constant 7.000000e+00 : f32
    %200 = vector.broadcast %cst_123 : f32 to vector<1x128xf32>
    %201 = arith.divf %199, %200 : vector<1x128xf32>
    %202 = arith.mulf %196, %196 : vector<1x128xf32>
    %203 = arith.subf %201, %202 : vector<1x128xf32>
    %cst_124 = arith.constant 0.000000e+00 : f32
    %204 = vector.broadcast %cst_124 : f32 to vector<1x128xf32>
    %205 = arith.maximumf %203, %204 : vector<1x128xf32>
    %206 = vector.broadcast %196 : vector<1x128xf32> to vector<7x128xf32>
    %207 = arith.subf %192, %206 : vector<7x128xf32>
    %cst_125 = arith.constant 9.99999974E-6 : f32
    %208 = vector.broadcast %cst_125 : f32 to vector<1x128xf32>
    %209 = arith.addf %205, %208 : vector<1x128xf32>
    %210 = math.rsqrt %209 : vector<1x128xf32>
    %211 = vector.broadcast %210 : vector<1x128xf32> to vector<7x128xf32>
    %212 = arith.mulf %207, %211 : vector<7x128xf32>
    %213 = vector.extract_strided_slice %166 {offsets = [1, 0], sizes = [1, 128], strides = [1, 1]} : vector<3x128xf32> to vector<1x128xf32>
    %214 = vector.broadcast %213 : vector<1x128xf32> to vector<7x128xf32>
    %215 = arith.mulf %212, %214 : vector<7x128xf32>
    %216 = vector.extract_strided_slice %166 {offsets = [2, 0], sizes = [1, 128], strides = [1, 1]} : vector<3x128xf32> to vector<1x128xf32>
    %217 = vector.broadcast %216 : vector<1x128xf32> to vector<7x128xf32>
    %218 = arith.addf %215, %217 : vector<7x128xf32>
    %cst_126 = arith.constant 0.000000e+00 : f32
    %219 = vector.broadcast %cst_126 : f32 to vector<7x128xf32>
    %220 = arith.cmpf oge, %218, %219 : vector<7x128xf32>
    %cst_127 = arith.constant 2.000000e-01 : f32
    %221 = vector.broadcast %cst_127 : f32 to vector<7x128xf32>
    %222 = arith.mulf %221, %218 : vector<7x128xf32>
    %223 = arith.select %220, %218, %222 : vector<7x128xi1>, vector<7x128xf32>
    %c1_128 = arith.constant 1 : index
    %c0_129 = arith.constant 0 : index
    %224 = vector.load %arg16[%c1_128, %c0_129] : memref<9x128xf32, #tpu.memory_space<vmem>>, vector<7x128xf32>
    tpu.vector_store %arg16[%c1_128, %c0_129], %223 {strides = array<i32>} : memref<9x128xf32, #tpu.memory_space<vmem>>, vector<7x128xf32>,
    %c0_130 = arith.constant 0 : index
    %c0_131 = arith.constant 0 : index
    %225 = vector.load %arg11[%c0_130, %c0_131] : memref<3x128xf32, #tpu.memory_space<vmem>>, vector<3x128xf32>
    %c0_132 = arith.constant 0 : index
    %c0_133 = arith.constant 0 : index
    %226 = vector.load %arg16[%c0_132, %c0_133] : memref<9x128xf32, #tpu.memory_space<vmem>>, vector<6x128xf32>
    %227 = arith.truncf %226 : vector<6x128xf32> to vector<6x128xbf16>
    %c0_134 = arith.constant 0 : index
    %c0_135 = arith.constant 0 : index
    %c0_136 = arith.constant 0 : index
    %228 = vector.load %arg6[%c0_134, %c0_135, %c0_136] : memref<4x128x128xbf16, #tpu.memory_space<vmem>>, vector<1x128x128xbf16>
    %229 = vector.shape_cast %228 : vector<1x128x128xbf16> to vector<128x128xbf16>
    %cst_137 = arith.constant dense<0.000000e+00> : vector<6x128xf32>
    %230 = tpu.matmul %227, %229, %cst_137 {dimension_numbers = #tpu.dot_dimension_numbers<[1], [0], [0], [1], [0, 0, 1, 1], [], []>} : vector<6x128xbf16>, vector<128x128xbf16>, vector<6x128xf32> -> vector<6x128xf32>
    %c1_138 = arith.constant 1 : index
    %c0_139 = arith.constant 0 : index
    %231 = vector.load %arg16[%c1_138, %c0_139] : memref<9x128xf32, #tpu.memory_space<vmem>>, vector<6x128xf32>
    %232 = arith.truncf %231 : vector<6x128xf32> to vector<6x128xbf16>
    %c1_140 = arith.constant 1 : index
    %c0_141 = arith.constant 0 : index
    %c0_142 = arith.constant 0 : index
    %233 = vector.load %arg6[%c1_140, %c0_141, %c0_142] : memref<4x128x128xbf16, #tpu.memory_space<vmem>>, vector<1x128x128xbf16>
    %234 = vector.shape_cast %233 : vector<1x128x128xbf16> to vector<128x128xbf16>
    %cst_143 = arith.constant dense<0.000000e+00> : vector<6x128xf32>
    %235 = tpu.matmul %232, %234, %cst_143 {dimension_numbers = #tpu.dot_dimension_numbers<[1], [0], [0], [1], [0, 0, 1, 1], [], []>} : vector<6x128xbf16>, vector<128x128xbf16>, vector<6x128xf32> -> vector<6x128xf32>
    %236 = arith.addf %230, %235 : vector<6x128xf32>
    %c2_144 = arith.constant 2 : index
    %c0_145 = arith.constant 0 : index
    %237 = vector.load %arg16[%c2_144, %c0_145] : memref<9x128xf32, #tpu.memory_space<vmem>>, vector<6x128xf32>
    %238 = arith.truncf %237 : vector<6x128xf32> to vector<6x128xbf16>
    %c2_146 = arith.constant 2 : index
    %c0_147 = arith.constant 0 : index
    %c0_148 = arith.constant 0 : index
    %239 = vector.load %arg6[%c2_146, %c0_147, %c0_148] : memref<4x128x128xbf16, #tpu.memory_space<vmem>>, vector<1x128x128xbf16>
    %240 = vector.shape_cast %239 : vector<1x128x128xbf16> to vector<128x128xbf16>
    %cst_149 = arith.constant dense<0.000000e+00> : vector<6x128xf32>
    %241 = tpu.matmul %238, %240, %cst_149 {dimension_numbers = #tpu.dot_dimension_numbers<[1], [0], [0], [1], [0, 0, 1, 1], [], []>} : vector<6x128xbf16>, vector<128x128xbf16>, vector<6x128xf32> -> vector<6x128xf32>
    %242 = arith.addf %236, %241 : vector<6x128xf32>
    %c3_150 = arith.constant 3 : index
    %c0_151 = arith.constant 0 : index
    %243 = vector.load %arg16[%c3_150, %c0_151] : memref<9x128xf32, #tpu.memory_space<vmem>>, vector<6x128xf32>
    %244 = arith.truncf %243 : vector<6x128xf32> to vector<6x128xbf16>
    %c3_152 = arith.constant 3 : index
    %c0_153 = arith.constant 0 : index
    %c0_154 = arith.constant 0 : index
    %245 = vector.load %arg6[%c3_152, %c0_153, %c0_154] : memref<4x128x128xbf16, #tpu.memory_space<vmem>>, vector<1x128x128xbf16>
    %246 = vector.shape_cast %245 : vector<1x128x128xbf16> to vector<128x128xbf16>
    %cst_155 = arith.constant dense<0.000000e+00> : vector<6x128xf32>
    %247 = tpu.matmul %244, %246, %cst_155 {dimension_numbers = #tpu.dot_dimension_numbers<[1], [0], [0], [1], [0, 0, 1, 1], [], []>} : vector<6x128xbf16>, vector<128x128xbf16>, vector<6x128xf32> -> vector<6x128xf32>
    %248 = arith.addf %242, %247 : vector<6x128xf32>
    %249 = vector.extract_strided_slice %225 {offsets = [0, 0], sizes = [1, 128], strides = [1, 1]} : vector<3x128xf32> to vector<1x128xf32>
    %250 = vector.broadcast %249 : vector<1x128xf32> to vector<6x128xf32>
    %251 = arith.addf %248, %250 : vector<6x128xf32>
    %c0_156 = arith.constant 0 : index
    %c0_157 = arith.constant 0 : index
    %c0_158 = arith.constant 0 : index
    %252 = vector.load %arg12[%c0_156, %c0_157, %c0_158] : memref<1x6x128xf32, #tpu.memory_space<vmem>>, vector<1x6x128xf32>
    %253 = vector.shape_cast %252 : vector<1x6x128xf32> to vector<6x128xf32>
    %254 = vector.shape_cast %251 : vector<6x128xf32> to vector<1x6x128xf32>
    tpu.vector_store %arg12[%c0_156, %c0_157, %c0_158], %254 {strides = array<i32>} : memref<1x6x128xf32, #tpu.memory_space<vmem>>, vector<1x6x128xf32>,
    return
  }
  func.func @transform_0(%arg0: i32) -> (i32, i32, i32) {
    %c0_i32 = arith.constant 0 : i32
    %c0_i32_0 = arith.constant 0 : i32
    %c0_i32_1 = arith.constant 0 : i32
    return %arg0, %c0_i32, %c0_i32_0 : i32, i32, i32
  }
  func.func @transform_1(%arg0: i32) -> (i32, i32) {
    %c0_i32 = arith.constant 0 : i32
    %c0_i32_0 = arith.constant 0 : i32
    %c0_i32_1 = arith.constant 0 : i32
    return %c0_i32, %c0_i32_0 : i32, i32
  }
  func.func @transform_2(%arg0: i32) -> (i32, i32, i32) {
    %c0_i32 = arith.constant 0 : i32
    %c0_i32_0 = arith.constant 0 : i32
    %c0_i32_1 = arith.constant 0 : i32
    %c0_i32_2 = arith.constant 0 : i32
    return %c0_i32, %c0_i32_0, %c0_i32_1 : i32, i32, i32
  }
  func.func @transform_3(%arg0: i32) -> (i32, i32, i32) {
    %c0_i32 = arith.constant 0 : i32
    %c0_i32_0 = arith.constant 0 : i32
    %c0_i32_1 = arith.constant 0 : i32
    %c0_i32_2 = arith.constant 0 : i32
    return %c0_i32, %c0_i32_0, %c0_i32_1 : i32, i32, i32
  }
  func.func @transform_4(%arg0: i32) -> (i32, i32, i32) {
    %c0_i32 = arith.constant 0 : i32
    %c0_i32_0 = arith.constant 0 : i32
    %c0_i32_1 = arith.constant 0 : i32
    %c0_i32_2 = arith.constant 0 : i32
    return %c0_i32, %c0_i32_0, %c0_i32_1 : i32, i32, i32
  }
  func.func @transform_5(%arg0: i32) -> (i32, i32, i32) {
    %c0_i32 = arith.constant 0 : i32
    %c0_i32_0 = arith.constant 0 : i32
    %c0_i32_1 = arith.constant 0 : i32
    %c0_i32_2 = arith.constant 0 : i32
    return %c0_i32, %c0_i32_0, %c0_i32_1 : i32, i32, i32
  }
  func.func @transform_6(%arg0: i32) -> (i32, i32) {
    %c0_i32 = arith.constant 0 : i32
    %c0_i32_0 = arith.constant 0 : i32
    %c0_i32_1 = arith.constant 0 : i32
    return %c0_i32, %c0_i32_0 : i32, i32
  }
  func.func @transform_7(%arg0: i32) -> (i32, i32) {
    %c0_i32 = arith.constant 0 : i32
    %c0_i32_0 = arith.constant 0 : i32
    %c0_i32_1 = arith.constant 0 : i32
    return %c0_i32, %c0_i32_0 : i32, i32
  }
  func.func @transform_8(%arg0: i32) -> (i32, i32) {
    %c0_i32 = arith.constant 0 : i32
    %c0_i32_0 = arith.constant 0 : i32
    %c0_i32_1 = arith.constant 0 : i32
    return %c0_i32, %c0_i32_0 : i32, i32
  }
  func.func @transform_9(%arg0: i32) -> (i32, i32) {
    %c0_i32 = arith.constant 0 : i32
    %c0_i32_0 = arith.constant 0 : i32
    %c0_i32_1 = arith.constant 0 : i32
    return %c0_i32, %c0_i32_0 : i32, i32
  }
  func.func @transform_10(%arg0: i32) -> (i32, i32) {
    %c0_i32 = arith.constant 0 : i32
    %c0_i32_0 = arith.constant 0 : i32
    %c0_i32_1 = arith.constant 0 : i32
    return %c0_i32, %c0_i32_0 : i32, i32
  }
  func.func @transform_11(%arg0: i32) -> (i32, i32, i32) {
    %c0_i32 = arith.constant 0 : i32
    %c0_i32_0 = arith.constant 0 : i32
    %c0_i32_1 = arith.constant 0 : i32
    return %arg0, %c0_i32, %c0_i32_0 : i32, i32, i32
  }
}

</mosaic_0001>

<bundles_post_ra>
// kernel: discriminator_forward.1
= control target key start
LH: loop header
LB: loop body
LE: loop exit
PB: predicated region body
PF: predicated region fallthrough
CT: control target
= control target key end

     0   :  { %16 = vsyncpa [#allocation7], 0  ;;  %s4018_s0 = inlined_call_operand.vmem [shape: f32[2,32,4], index: 0, kind: input, shape index: {}]   ;;  %s4019_s1 = inlined_call_operand.vmem [shape: f32[4,128], index: 1, kind: input, shape index: {}]   ;;  %s4020_s2 = inlined_call_operand.hbm [shape: bf16[4,128,128], index: 2, kind: input, shape index: {}]   ;;  %s4021_s3 = inlined_call_operand.hbm [shape: bf16[4,128,128], index: 3, kind: input, shape index: {}]   ;;  %s4022_s4 = inlined_call_operand.vmem [shape: bf16[4,128,128], index: 4, kind: input, shape index: {}]   ;;  %s4023_s5 = inlined_call_operand.vmem [shape: bf16[4,128,128], index: 5, kind: input, shape index: {}]   ;;  %s4024_s6 = inlined_call_operand.vmem [shape: f32[3,128], index: 6, kind: input, shape index: {}]   ;;  %s4025_s7 = inlined_call_operand.vmem [shape: f32[3,128], index: 7, kind: input, shape index: {}]   ;;  %s4026_s8 = inlined_call_operand.vmem [shape: f32[3,128], index: 8, kind: input, shape index: {}]   ;;  %s4027_s9 = inlined_call_operand.vmem [shape: f32[3,128], index: 9, kind: input, shape index: {}]   ;;  %s4028_s10 = inlined_call_operand.vmem [shape: f32[3,128], index: 10, kind: input, shape index: {}]   ;;  %s4029_s11 = inlined_call_operand.vmem [shape: f32[2,6,128], index: 11, kind: output, shape index: {}]  }
   0x1   :  { %17 = vsyncpa [#allocation9], 0  ;;  %s3548_s17 = smov 0  }
   0x2 LB: > { %s3554_s18 = sadd.s32 4294967295, %s3476_s17   ;;  %p2530_p0 = scmp.ge.s32.totalorder %s3476_s17, 1  ;;  %s3476_s17 = sphi %s3548_s17, %s23_s17  }
   0x3   : > { %p290_p1 = scmp.lt.s32.totalorder %s3476_s17, 3  ;;  %s3478_s19 = smov [#allocation6]  }
   0x4   : > { %s305_s20 = sshll.u32 %s3478_s19, 4  ;;  %p3246_p3 = scmp.eq.s32.totalorder %s3554_s18, 0  ;;  %s306_s20 = int_to_ptr.vmem [resolvable:$true] %s305_s20 }
   0x5   : > { %p3558_p2 = pnand %p2530_p0, %p290_p1  ;;  %s3479_s22 = smov [#allocation8]  }
   0x6   : > { %s318_s23 = sshll.u32 %s3479_s22, 4  ;;  %s3421_s25 = scalar_lea.vmem %s306_s20, 4096  ;;  %s319_s23 = int_to_ptr.vmem [resolvable:$true] %s318_s23 }
   0x7   : > { %p3239_p4 = pneg %p3558_p2  ;;  %p3422_p7 = scmp.ne.s32.totalorder %s306_s20, %s3421_s25 }
   0x8   : > { %p3429_p10 = scmp.lt.s32.totalorder %s306_s20, %s306_s20  ;;  %p3430_p11 = scmp.lt.s32.totalorder %s3421_s25, %s3421_s25 }
   0x9   : > { %p3567_p5 = pnand %p3246_p3, %p3239_p4 }
   0xa   : > { %p3431_p12 = por %p3430_p11, %p3429_p10 }
   0xb   : > { %p3412_p6 = pneg %p3567_p5 }
   0xd   : > { %p3424_p8 = pnand %p3422_p7, %p3412_p6 }
   0xf   : > { %p3425_p9 = pneg %p3424_p8 }
  0x11   : > { %p3432_p13 = pnand %p3431_p12, %p3425_p9 }
  0x13   : > { %3435 = shalt.err (!%p3432_p13)
}
  0x14   : > { %s3480_s26 = smov 64   ;;  %s3481_s27 = smov 4  }
  0x15   : > { %3242 = dma.hbm_to_vmem [thread:$0]  (!%p3567_p5), %s4020_s2, 4096, %s306_s20, [#allocation7], %s3480_s26, %s3480_s26, %s3481_s27  }
  0x16   : > { %s3447_s30 = scalar_lea.vmem %s319_s23, 4096  ;;  %p3455_p7 = scmp.lt.s32.totalorder %s319_s23, %s319_s23 }
  0x17   : > { %p3448_p0 = scmp.ne.s32.totalorder %s319_s23, %s3447_s30  ;;  %p3456_p8 = scmp.lt.s32.totalorder %s3447_s30, %s3447_s30 }
  0x19   : > { %p3450_p1 = pnand %p3448_p0, %p3412_p6  ;;  %p3457_p10 = por %p3456_p8, %p3455_p7 }
  0x1b   : > { %p3451_p4 = pneg %p3450_p1 }
  0x1d   : > { %p3458_p9 = pnand %p3457_p10, %p3451_p4 }
  0x1f   : > { %3461 = shalt.err (!%p3458_p9)
}
  0x20   : > { %3245 = dma.hbm_to_vmem [thread:$0]  (!%p3567_p5), %s4021_s3, 4096, %s319_s23, [#allocation9], %s3480_s26, %s3480_s26, %s3481_s27  }
  0x21   : > { %363 = sbr.rel (%p3558_p2) target bundleno = 1322 (0x52a), region = 64 }
  0x26   : > { %3467 = dma.done.wait (%p3246_p3), [#allocation7], 4096  }
  0x27   : > { %3469 = vsyncadd (%p3246_p3), [#allocation7], 4294963200 }
  0x28   : > { %3471 = dma.done.wait (%p3246_p3), [#allocation9], 4096  }
  0x29   : > { %3473 = vsyncadd (%p3246_p3), [#allocation9], 4294963200  ;;  %p406_p6 = scmp.lt.s32.totalorder %s3554_s18, 1  ;;  %v3482_v0 = vmov 0   ;;  %v3483_v5 = vmov 1   ;;  %v3276_v6 = vld [vmem:[#allocation6 + $0x78] sm:$0xff]   ;;  %v450_v27 = vlaneseq }
  0x2a   : > { %3269 = vset.pattern.permute.xlu1 %v3482_v0  ;;  %3268 = vset.pattern.permute.xlu0 %v3482_v0  ;;  %v3277_v7 = vld [vmem:[#allocation6 + $0x38] sm:$0xff]   ;;  %v3484_v8 = vmov 2   ;;  %v3485_v9 = vmov 0.0   ;;  %v3278_v10 = vld [vmem:[#allocation6 + $0x70] sm:$0xff]   ;;  %v3486_v12 = vmov 3   ;;  %v3280_v13 = vld [vmem:[#allocation6 + $0x68] sm:$0xff]  }
  0x2b   : > { %s4033_s18 = smov (!%p406_p6, %s3554_s18), 1  ;;  %416 = vst [vmem:[#allocation2] sm:$0x1] %v3485_v9  ;;  %417 = vst [vmem:[#allocation2 + $0x21] sm:$0x1] %v3485_v9  ;;  %2911 = vmatprep.subr.bf16.mxu0 %v3485_v9  ;;  %2931 = vmatprep.subr.bf16.mxu1 %v3485_v9  ;;  %v3279_v11 = vld [vmem:[#allocation6 + $0x30] sm:$0xff]  }
  0x2c   : > { %s2766_s14 = sshll.u32 %s4033_s18, 5  ;;  %418 = vst [vmem:[#allocation3] sm:$0x1] %v3485_v9  ;;  %419 = vst [vmem:[#allocation3 + $0x11] sm:$0x1] %v3485_v9  ;;  %2912 = vmatpush3.bf16.msra.mxu0 %v3276_v6  ;;  %2932 = vmatpush3.bf16.msra.mxu1 %v3277_v7  ;;  %v3281_v14 = vld [vmem:[#allocation6 + $0x28] sm:$0xff]  }
  0x2d   : > { %s410_s19 = scalar_lea.vmem %s4018_s0, %s2766_s14  ;;  %420 = vst [vmem:[#allocation4] sm:$0x1] %v3485_v9  ;;  %421 = vst [vmem:[#allocation4 + $0x9] sm:$0x1] %v3485_v9  ;;  %2913 = vmatprep.subr.bf16.mxu0 %v3485_v9  ;;  %2933 = vmatprep.subr.bf16.mxu1 %v3485_v9  ;;  %v3282_v15 = vld [vmem:[#allocation6 + $0x60] sm:$0xff]   ;;  %v3284_v17 = vld [vmem:[#allocation6 + $0x58] sm:$0xff]  }
  0x2e   : > { %v3607_v1 = vld [vmem:[%s410_s19 + $0x10] sm:$0xff]  ;;  %v425_v2 = vld [vmem:[%s410_s19] sm:$0xff]  ;;  %v428_v3 = vld [vmem:[%s410_s19 + $0x18] sm:$0xff]  ;;  %422 = vst [vmem:[#allocation5] sm:$0x1] %v3485_v9  ;;  %vm3487_vm0 = vmmov 0  }
  0x2f   : > { %442 = vperm.xlu1 %3269, %v3607_v1   ;;  %432 = vperm.xlu0 %3268, %v425_v2   ;;  %v426_v4 = vld [vmem:[%s410_s19 + $0x8] sm:$0xff]  ;;  %423 = vst [vmem:[#allocation5 + $0x8] sm:$0x1] %v3485_v9  ;;  %v3283_v16 = vld [vmem:[#allocation6 + $0x20] sm:$0xff]   ;;  %v3285_v18 = vld [vmem:[#allocation6 + $0x18] sm:$0xff]   ;;  %v451_v30 = vshrl.u32 %v450_v27, 7 }
  0x30   : > { %2914 = vmatpush3.bf16.msra.mxu0 %v3278_v10  ;;  %2934 = vmatpush3.bf16.msra.mxu1 %v3279_v11  ;;  %v3286_v19 = vld [vmem:[#allocation6 + $0x50] sm:$0xff]   ;;  %v3288_v21 = vld [vmem:[#allocation6 + $0x48] sm:$0xff]   ;;  %v3290_v23 = vld [vmem:[#allocation6 + $0x40] sm:$0xff]   ;;  %vm1977_vm8 = vcmask 1046528   ;;  %s2539_s24 = sshll.u32 %s4033_s18, 3 }
  0x31   : > { %2915 = vmatprep.subr.bf16.mxu0 %v3485_v9  ;;  %2935 = vmatprep.subr.bf16.mxu1 %v3485_v9  ;;  %v3287_v20 = vld [vmem:[#allocation6 + $0x10] sm:$0xff]   ;;  %v3289_v22 = vld [vmem:[#allocation6 + $0x8] sm:$0xff]   ;;  %v3291_v24 = vld [vmem:[#allocation6] sm:$0xff]   ;;  %v3643_v33 = vsub.s32 1, %v451_v30  ;;  %v3645_v34 = vsub.s32 0, %v451_v30  ;;  %v3647_v35 = vsub.s32 2, %v451_v30  ;;  %s414_s27 = scalar_lea.vmem %s4029_s11, %s2539_s24 }
  0x32   : > { %2927 = vmatprep.mubr.msk.bf16.mxu0 %vm3487_vm0, %v3485_v9  ;;  %2947 = vmatprep.mubr.msk.bf16.mxu1 %vm3487_vm0, %v3485_v9  ;;  %v429_v36 = vld [vmem:[%s4019_s1] sm:$0xf]  ;;  %v532_v42 = vsub.s32 3, %v451_v30 }
  0x33   : > { %447 = vperm.xlu1 %3269, %v428_v3   ;;  %437 = vperm.xlu0 %3268, %v426_v4   ;;  %v477_v39 = vrot.slane %v429_v36, %v3643_v33  ;;  %v453_v40 = vrot.slane %v429_v36, %v3645_v34  ;;  %v505_v41 = vrot.slane %v429_v36, %v3647_v35  ;;  %v424_v49 = vld [vmem:[%s4024_s6] sm:$0x7] }
  0x34   : > { %2916 = vmatpush3.bf16.msra.mxu0 %v3280_v13  ;;  %2936 = vmatpush3.bf16.msra.mxu1 %v3281_v14  ;;  %v533_v48 = vrot.slane %v429_v36, %v532_v42  ;;  %v545_v56 = vrot.slane %v424_v49, %v3645_v34  ;;  %v3293_v36 = vld [vmem:[#allocation6 + $0xf8] sm:$0xff]   ;;  %v3294_v42 = vld [vmem:[#allocation6 + $0xb0] sm:$0xff]  }
  0x35   : > { %2917 = vmatprep.subr.bf16.mxu0 %v3485_v9  ;;  %2937 = vmatprep.subr.bf16.mxu1 %v3485_v9  ;;  %v3301_v49 = vld [vmem:[#allocation6 + $0xd8] sm:$0xff]  }
  0x37   : > { %3271 = vset.pattern.permute.xlu1 %v3483_v5  ;;  %3270 = vset.pattern.permute.xlu0 %v3483_v5 }
  0x38   : > { %463 = vperm.xlu1 %3271, %v426_v4   ;;  %459 = vperm.xlu0 %3270, %v425_v2  }
  0x39   : > { %2918 = vmatpush3.bf16.msra.mxu0 %v3282_v15  ;;  %2938 = vmatpush3.bf16.msra.mxu1 %v3283_v16 }
  0x3a   : > { %2919 = vmatprep.subr.bf16.mxu0 %v3485_v9  ;;  %2939 = vmatprep.subr.bf16.mxu1 %v3485_v9 }
  0x3c   : > { %467 = vperm.xlu1 %3271, %v3607_v1   ;;  %471 = vperm.xlu0 %3270, %v428_v3  }
  0x3d   : > { %2920 = vmatpush3.bf16.msra.mxu0 %v3284_v17  ;;  %2940 = vmatpush3.bf16.msra.mxu1 %v3285_v18 }
  0x3e   : > { %2921 = vmatprep.subr.bf16.mxu0 %v3485_v9  ;;  %2941 = vmatprep.subr.bf16.mxu1 %v3485_v9 }
  0x40   : > { %3272 = vset.pattern.permute.xlu1 %v3484_v8  ;;  %3273 = vset.pattern.permute.xlu0 %v3484_v8 }
  0x41   : > { %487 = vperm.xlu1 %3272, %v425_v2   ;;  %491 = vperm.xlu0 %3273, %v426_v4  }
  0x42   : > { %2922 = vmatpush3.bf16.msra.mxu0 %v3286_v19  ;;  %2942 = vmatpush3.bf16.msra.mxu1 %v3287_v20 }
  0x43   : > { %2923 = vmatprep.subr.bf16.mxu0 %v3485_v9  ;;  %2943 = vmatprep.subr.bf16.mxu1 %v3485_v9 }
  0x45   : > { %495 = vperm.xlu1 %3272, %v3607_v1   ;;  %3274 = vset.pattern.permute.xlu0 %v3486_v12 }
  0x46   : > { %515 = vperm.xlu0 %3274, %v425_v2   ;;  %2924 = vmatpush3.bf16.msra.mxu0 %v3288_v21 }
  0x47   : > { %2944 = vmatpush3.bf16.msra.mxu1 %v3289_v22  ;;  %2925 = vmatprep.subr.bf16.mxu0 %v3485_v9 }
  0x48   : > { %2945 = vmatprep.subr.bf16.mxu1 %v3485_v9 }
  0x49   : > { %499 = vperm.xlu1 %3272, %v428_v3  }
  0x4a   : > { %527 = vperm.xlu0 %3274, %v428_v3   ;;  %2926 = vmatpush3.bf16.msra.mxu0 %v3290_v23 }
  0x4b   : > { %2946 = vmatpush3.bf16.msra.mxu1 %v3291_v24  ;;  %2951 = vmatprep.subr.bf16.mxu0 %v3485_v9 }
  0x4c   : > { %2971 = vmatprep.subr.bf16.mxu1 %v3485_v9 }
  0x4d   : > { %3275 = vset.pattern.permute.xlu1 %v3486_v12 }
  0x4e   : > { %519 = vperm.xlu1 %3275, %v426_v4  }
  0x52   : > { %523 = vperm.xlu1 %3275, %v3607_v1  }
  0xaa   : > { %v443_v25 = vpop.permute.xlu1 %442  ;;  %v433_v26 = vpop.permute.xlu0 %432 }
  0xab   : > { %v454_v43 = vmul.f32 %v453_v40, %v433_v26  ;;  %v456_v8 = vmul.f32 %v453_v40, %v443_v25 }
  0xae   : > { %v448_v28 = vpop.permute.xlu1 %447  ;;  %v438_v29 = vpop.permute.xlu0 %437 }
  0xaf   : > { %v457_v57 = vmul.f32 %v453_v40, %v448_v28  ;;  %v455_v58 = vmul.f32 %v453_v40, %v438_v29 }
  0xb3   : > { %v464_v31 = vpop.permute.xlu1 %463  ;;  %v460_v32 = vpop.permute.xlu0 %459 }
  0xb4   : > { %v478_v44 = vmul.f32 %v477_v39, %v460_v32  ;;  %v479_v59 = vmul.f32 %v477_v39, %v464_v31  ;;  %v3292_v32 = vld [vmem:[#allocation6 + $0xb8] sm:$0xff]  }
  0xb6   : > { %v482_v50 = vadd.f32 %v478_v44, %v454_v43  ;;  %v483_v5 = vadd.f32 %v479_v59, %v455_v58  ;;  %v3295_v43 = vld [vmem:[#allocation6 + $0xf0] sm:$0xff]   ;;  %v3296_v44 = vld [vmem:[#allocation6 + $0xa8] sm:$0xff]  }
  0xb7   : > { %v468_v37 = vpop.permute.xlu1 %467  ;;  %v472_v38 = vpop.permute.xlu0 %471 }
  0xb8   : > { %v481_v52 = vmul.f32 %v477_v39, %v472_v38  ;;  %v480_v6 = vmul.f32 %v477_v39, %v468_v37 }
  0xba   : > { %v485_v62 = vadd.f32 %v481_v52, %v457_v57  ;;  %v484_v17 = vadd.f32 %v480_v6, %v456_v8  ;;  %v3304_v52 = vld [vmem:[#allocation6 + $0x88] sm:$0xff]   ;;  %v3316_v6 = vld [vmem:[#allocation8 + $0x58] sm:$0xff]   ;;  %v3318_v8 = vld [vmem:[#allocation8 + $0x50] sm:$0xff]  }
  0xbc   : > { %v488_v45 = vpop.permute.xlu1 %487  ;;  %v492_v46 = vpop.permute.xlu0 %491 }
  0xbd   : > { %v506_v47 = vmul.f32 %v505_v41, %v488_v45  ;;  %v507_v1 = vmul.f32 %v505_v41, %v492_v46  ;;  %v3297_v45 = vld [vmem:[#allocation6 + $0xe8] sm:$0xff]   ;;  %v3298_v46 = vld [vmem:[#allocation6 + $0xa0] sm:$0xff]  }
  0xbf   : > { %v510_v54 = vadd.f32 %v506_v47, %v482_v50  ;;  %v511_v12 = vadd.f32 %v507_v1, %v483_v5  ;;  %v3299_v47 = vld [vmem:[#allocation6 + $0xe0] sm:$0xff]   ;;  %v3302_v50 = vld [vmem:[#allocation6 + $0x90] sm:$0xff]  }
  0xc0   : > { %v496_v51 = vpop.permute.xlu1 %495  ;;  %v3311_v1 = vld [vmem:[#allocation8 + $0x30] sm:$0xff]   ;;  %v3315_v5 = vld [vmem:[#allocation8 + $0x20] sm:$0xff]  }
  0xc1   : > { %v516_v53 = vpop.permute.xlu0 %515  ;;  %v508_v13 = vmul.f32 %v505_v41, %v496_v51  ;;  %v3303_v51 = vld [vmem:[#allocation6 + $0xd0] sm:$0xff]  }
  0xc2   : > { %v534_v55 = vmul.f32 %v533_v48, %v516_v53  ;;  %v3305_v53 = vld [vmem:[#allocation6 + $0xc8] sm:$0xff]  }
  0xc3   : > { %v512_v21 = vadd.f32 %v508_v13, %v484_v17  ;;  %v3322_v13 = vld [vmem:[#allocation8 + $0x40] sm:$0xff]  }
  0xc4   : > { %v538_v60 = vadd.f32 %v534_v55, %v510_v54  ;;  %v500_v61 = vpop.permute.xlu1 %499  ;;  %v3306_v54 = vld [vmem:[#allocation6 + $0x80] sm:$0xff]  }
  0xc5   : > { %v509_v63 = vmul.f32 %v505_v41, %v500_v61  ;;  %v528_v0 = vpop.permute.xlu0 %527  ;;  %v3307_v55 = vld [vmem:[#allocation6 + $0xc0] sm:$0xff]  }
  0xc6   : > { %v546_v2 = vadd.f32 %v545_v56, %v538_v60  ;;  %v537_v3 = vmul.f32 %v533_v48, %v528_v0  ;;  %v3310_v0 = vld [vmem:[#allocation8 + $0x70] sm:$0xff]  }
  0xc7   : > { %v513_v4 = vadd.f32 %v509_v63, %v485_v62  ;;  %v3308_v62 = vld [vmem:[#allocation8 + $0x78] sm:$0xff]  }
  0xc8   : > { %vm550_vm1 = vcmp.ge.f32.partialorder %v546_v2, 0.0  ;;  %v554_v7 = vmul.f32 0.2, %v546_v2  ;;  %v3309_v63 = vld [vmem:[#allocation8 + $0x38] sm:$0xff]  }
  0xc9   : > { %v541_v10 = vadd.f32 %v537_v3, %v513_v4  ;;  %v520_v11 = vpop.permute.xlu1 %519  ;;  %v3313_v3 = vld [vmem:[#allocation8 + $0x28] sm:$0xff]   ;;  %v3314_v4 = vld [vmem:[#allocation8 + $0x60] sm:$0xff]  }
  0xca   : > { %v558_v14 = vsel %vm550_vm1, %v546_v2, %v554_v7  ;;  %v535_v15 = vmul.f32 %v533_v48, %v520_v11  ;;  %v3312_v2 = vld [vmem:[#allocation8 + $0x68] sm:$0xff]   ;;  %v3317_v7 = vld [vmem:[#allocation8 + $0x18] sm:$0xff]  }
  0xcb   : > { %562 = vst [vmem:[#allocation2 + $0x1] sm:$0xff] %v558_v14  ;;  %v549_v16 = vadd.f32 %v545_v56, %v541_v10  ;;  %v3319_v10 = vld [vmem:[#allocation8 + $0x10] sm:$0xff]   ;;  %v3320_v11 = vld [vmem:[#allocation8 + $0x48] sm:$0xff]   ;;  %v3323_v14 = vld [vmem:[#allocation8] sm:$0xff]  }
  0xcc   : > { %v539_v18 = vadd.f32 %v535_v15, %v511_v12  ;;  %v3321_v12 = vld [vmem:[#allocation8 + $0x8] sm:$0xff]  }
  0xcd   : > { %vm553_vm2 = vcmp.ge.f32.partialorder %v549_v16, 0.0  ;;  %v557_v19 = vmul.f32 0.2, %v549_v16  ;;  %v524_v20 = vpop.permute.xlu1 %523 }
  0xce   : > { %v547_v22 = vadd.f32 %v545_v56, %v539_v18  ;;  %v536_v23 = vmul.f32 %v533_v48, %v524_v20  ;;  %v3300_v48 = vld [vmem:[#allocation6 + $0x98] sm:$0xff]  }
  0xcf   : > { %v561_v24 = vsel %vm553_vm2, %v549_v16, %v557_v19 }
  0xd0   : > { %565 = vst [vmem:[#allocation2 + $0x19] sm:$0xff] %v561_v24  ;;  %vm551_vm3 = vcmp.ge.f32.partialorder %v547_v22, 0.0  ;;  %v555_v25 = vmul.f32 0.2, %v547_v22  ;;  %v540_v26 = vadd.f32 %v536_v23, %v512_v21 }
  0xd2   : > { %v559_v27 = vsel %vm551_vm3, %v547_v22, %v555_v25  ;;  %v548_v28 = vadd.f32 %v545_v56, %v540_v26  ;;  %v566_v25 = vld [vmem:[%s4025_s7] sm:$0x7] }
  0xd3   : > { %563 = vst [vmem:[#allocation2 + $0x9] sm:$0xff] %v559_v27 }
  0xd4   : > { %vm552_vm4 = vcmp.ge.f32.partialorder %v548_v28, 0.0  ;;  %v556_v29 = vmul.f32 0.2, %v548_v28 }
  0xd6   : > { %v560_v30 = vsel %vm552_vm4, %v548_v28, %v556_v29 }
  0xd7   : > { %564 = vst [vmem:[#allocation2 + $0x11] sm:$0xff] %v560_v30 }
  0xda   : > { %v588_v31 = vld [vmem:[#allocation2 + $0x1] ss:$2 sm:$0xff]  ;;  %v567_v38 = vld [vmem:[#allocation2] ss:$2 sm:$0xff] }
  0xdb   : > { %v788_v59 = vld [vmem:[#allocation2 + $0x2] ss:$2 sm:$0xff] }
  0xde   : > { %v590_v37 = vld [vmem:[#allocation2 + $0x11] ss:$2 sm:$0xff]  ;;  %v569_v39 = vld [vmem:[#allocation2 + $0x10] ss:$2 sm:$0xff] }
  0xdf   : > { %v591_v40 = vpack.c.bf16 %v590_v37, %v588_v31  ;;  %v570_v41 = vpack.c.bf16 %v569_v39, %v567_v38  ;;  %v790_v56 = vld [vmem:[#allocation2 + $0x12] ss:$2 sm:$0xff]  ;;  %v901_v57 = vld [vmem:[#allocation2 + $0x3] ss:$2 sm:$0xff]  ;;  %v903_v58 = vld [vmem:[#allocation2 + $0x13] ss:$2 sm:$0xff] }
  0xe0   : > { %v791_v60 = vpack.c.bf16 %v790_v56, %v788_v59  ;;  %v904_v61 = vpack.c.bf16 %v903_v58, %v901_v57 }
  0xe1   : > { %2928 = vmatmul.mubr.bf16.vlgmr.msra.gmra.mxu0 %v591_v40  ;;  %2948 = vmatmul.mubr.bf16.vlgmr.msra.gmra.mxu1 %v570_v41 }
  0xe2   : > { %2952 = vmatpush3.bf16.msra.mxu0 %v3292_v32  ;;  %2972 = vmatpush3.bf16.msra.mxu1 %v3293_v36  ;;  %v1016_v32 = vrot.slane %v566_v25, %v3645_v34 }
  0xe3   : > { %2953 = vmatprep.subr.bf16.mxu0 %v3485_v9  ;;  %2973 = vmatprep.subr.bf16.mxu1 %v3485_v9 }
  0xe4   : > { %2967 = vmatprep.mubr.msk.bf16.mxu0 %vm3487_vm0, %v3485_v9  ;;  %2987 = vmatprep.mubr.msk.bf16.mxu1 %vm3487_vm0, %v3485_v9 }
  0xe6   : > { %2954 = vmatpush3.bf16.msra.mxu0 %v3294_v42  ;;  %2974 = vmatpush3.bf16.msra.mxu1 %v3295_v43 }
  0xe7   : > { %2955 = vmatprep.subr.bf16.mxu0 %v3485_v9  ;;  %2975 = vmatprep.subr.bf16.mxu1 %v3485_v9 }
  0xea   : > { %2956 = vmatpush3.bf16.msra.mxu0 %v3296_v44  ;;  %2976 = vmatpush3.bf16.msra.mxu1 %v3297_v45 }
  0xeb   : > { %2957 = vmatprep.subr.bf16.mxu0 %v3485_v9  ;;  %2977 = vmatprep.subr.bf16.mxu1 %v3485_v9 }
  0xee   : > { %2958 = vmatpush3.bf16.msra.mxu0 %v3298_v46  ;;  %2978 = vmatpush3.bf16.msra.mxu1 %v3299_v47 }
  0xef   : > { %2959 = vmatprep.subr.bf16.mxu0 %v3485_v9  ;;  %2979 = vmatprep.subr.bf16.mxu1 %v3485_v9 }
  0xf2   : > { %2960 = vmatpush3.bf16.msra.mxu0 %v3300_v48  ;;  %2980 = vmatpush3.bf16.msra.mxu1 %v3301_v49 }
  0xf3   : > { %2961 = vmatprep.subr.bf16.mxu0 %v3485_v9  ;;  %2981 = vmatprep.subr.bf16.mxu1 %v3485_v9 }
  0xf6   : > { %2962 = vmatpush3.bf16.msra.mxu0 %v3302_v50  ;;  %2982 = vmatpush3.bf16.msra.mxu1 %v3303_v51 }
  0xf7   : > { %2963 = vmatprep.subr.bf16.mxu0 %v3485_v9  ;;  %2983 = vmatprep.subr.bf16.mxu1 %v3485_v9 }
  0xfa   : > { %2964 = vmatpush3.bf16.msra.mxu0 %v3304_v52  ;;  %2984 = vmatpush3.bf16.msra.mxu1 %v3305_v53 }
  0xfb   : > { %2965 = vmatprep.subr.bf16.mxu0 %v3485_v9  ;;  %2985 = vmatprep.subr.bf16.mxu1 %v3485_v9 }
  0xfe   : > { %2966 = vmatpush3.bf16.msra.mxu0 %v3306_v54  ;;  %2986 = vmatpush3.bf16.msra.mxu1 %v3307_v55 }
  0xff   : > { %2991 = vmatprep.subr.bf16.mxu0 %v3485_v9  ;;  %3011 = vmatprep.subr.bf16.mxu1 %v3485_v9 }
 0x101   : > { %2968 = vmatmul.mubr.bf16.vlgmr.msra.gmra.mxu0 %v791_v60  ;;  %2988 = vmatmul.mubr.bf16.vlgmr.msra.gmra.mxu1 %v904_v61 }
 0x102   : > { %3007 = vmatprep.mubr.msk.bf16.mxu0 %vm3487_vm0, %v3485_v9  ;;  %3027 = vmatprep.mubr.msk.bf16.mxu1 %vm3487_vm0, %v3485_v9 }
 0x103   : > { %2992 = vmatpush3.bf16.msra.mxu0 %v3308_v62  ;;  %3012 = vmatpush3.bf16.msra.mxu1 %v3309_v63 }
 0x104   : > { %2993 = vmatprep.subr.bf16.mxu0 %v3485_v9  ;;  %3013 = vmatprep.subr.bf16.mxu1 %v3485_v9 }
 0x107   : > { %2994 = vmatpush3.bf16.msra.mxu0 %v3310_v0  ;;  %3014 = vmatpush3.bf16.msra.mxu1 %v3311_v1 }
 0x108   : > { %2995 = vmatprep.subr.bf16.mxu0 %v3485_v9  ;;  %3015 = vmatprep.subr.bf16.mxu1 %v3485_v9 }
 0x10b   : > { %2996 = vmatpush3.bf16.msra.mxu0 %v3312_v2  ;;  %3016 = vmatpush3.bf16.msra.mxu1 %v3313_v3  ;;  %v1050_v2 = vrot.slane %v566_v25, %v3643_v33 }
 0x10c   : > { %2997 = vmatprep.subr.bf16.mxu0 %v3485_v9  ;;  %3017 = vmatprep.subr.bf16.mxu1 %v3485_v9 }
 0x10f   : > { %2998 = vmatpush3.bf16.msra.mxu0 %v3314_v4  ;;  %3018 = vmatpush3.bf16.msra.mxu1 %v3315_v5 }
 0x110   : > { %2999 = vmatprep.subr.bf16.mxu0 %v3485_v9  ;;  %3019 = vmatprep.subr.bf16.mxu1 %v3485_v9 }
 0x113   : > { %3000 = vmatpush3.bf16.msra.mxu0 %v3316_v6  ;;  %3020 = vmatpush3.bf16.msra.mxu1 %v3317_v7  ;;  %v1056_v6 = vrot.slane %v566_v25, %v3647_v35  ;;  %v3327_v25 = vld [vmem:[#allocation8 + $0xf0] sm:$0xff]  }
 0x114   : > { %3001 = vmatprep.subr.bf16.mxu0 %v3485_v9  ;;  %3021 = vmatprep.subr.bf16.mxu1 %v3485_v9 }
 0x117   : > { %3002 = vmatpush3.bf16.msra.mxu0 %v3318_v8  ;;  %3022 = vmatpush3.bf16.msra.mxu1 %v3319_v10 }
 0x118   : > { %3003 = vmatprep.subr.bf16.mxu0 %v3485_v9  ;;  %3023 = vmatprep.subr.bf16.mxu1 %v3485_v9 }
 0x11b   : > { %3004 = vmatpush3.bf16.msra.mxu0 %v3320_v11  ;;  %3024 = vmatpush3.bf16.msra.mxu1 %v3321_v12 }
 0x11c   : > { %3005 = vmatprep.subr.bf16.mxu0 %v3485_v9  ;;  %3025 = vmatprep.subr.bf16.mxu1 %v3485_v9 }
 0x11f   : > { %3006 = vmatpush3.bf16.msra.mxu0 %v3322_v13  ;;  %3026 = vmatpush3.bf16.msra.mxu1 %v3323_v14 }
 0x120   : > { %3031 = vmatprep.subr.bf16.mxu0 %v3485_v9  ;;  %3051 = vmatprep.subr.bf16.mxu1 %v3485_v9 }
 0x1a1   : > { %v691_v15 = vpop.f32.mrf.mxu0  ;;  %v780_v16 = vpop.f32.mrf.mxu1 }
 0x1a2   : > { %v781_v23 = vadd.f32 %v780_v16, %v691_v15 }
 0x1a3   : > { %v2929_v17 = vpop.f32.mrf.mxu0  ;;  %v2949_v18 = vpop.f32.mrf.mxu1 }
 0x1a4   : > { %v3324_v18 = vld [vmem:[#allocation8 + $0xb8] sm:$0xff]  }
 0x1a5   : > { %v694_v19 = vpop.f32.mrf.mxu0  ;;  %v783_v20 = vpop.f32.mrf.mxu1 }
 0x1a6   : > { %v784_v30 = vadd.f32 %v783_v20, %v694_v19 }
 0x1a7   : > { %v2930_v21 = vpop.f32.mrf.mxu0  ;;  %v2950_v22 = vpop.f32.mrf.mxu1 }
 0x1a8   : > { %v3325_v21 = vld [vmem:[#allocation8 + $0xf8] sm:$0xff]  }
 0x1c1   : > { %v891_v24 = vpop.f32.mrf.mxu0  ;;  %v1004_v26 = vpop.f32.mrf.mxu1 }
 0x1c2   : > { %v898_v27 = vadd.f32 %v891_v24, %v781_v23  ;;  %v3326_v24 = vld [vmem:[#allocation8 + $0xb0] sm:$0xff]  }
 0x1c3   : > { %v2969_v28 = vpop.f32.mrf.mxu0  ;;  %v2989_v29 = vpop.f32.mrf.mxu1 }
 0x1c4   : > { %v1011_v31 = vadd.f32 %v1004_v26, %v898_v27  ;;  %v3328_v26 = vld [vmem:[#allocation8 + $0xa8] sm:$0xff]   ;;  %v3330_v28 = vld [vmem:[#allocation8 + $0xa0] sm:$0xff]  }
 0x1c5   : > { %v894_v36 = vpop.f32.mrf.mxu0  ;;  %v1007_v37 = vpop.f32.mrf.mxu1  ;;  %v3329_v27 = vld [vmem:[#allocation8 + $0xe8] sm:$0xff]   ;;  %v3331_v29 = vld [vmem:[#allocation8 + $0xe0] sm:$0xff]  }
 0x1c6   : > { %v899_v38 = vadd.f32 %v894_v36, %v784_v30  ;;  %v1017_v41 = vadd.f32 %v1016_v32, %v1011_v31  ;;  %v3332_v30 = vld [vmem:[#allocation8 + $0x98] sm:$0xff]   ;;  %v3335_v36 = vld [vmem:[#allocation8 + $0xd0] sm:$0xff]  }
 0x1c7   : > { %v2970_v39 = vpop.f32.mrf.mxu0  ;;  %v2990_v40 = vpop.f32.mrf.mxu1  ;;  %v3333_v31 = vld [vmem:[#allocation8 + $0xd8] sm:$0xff]  }
 0x1c8   : > { %v1012_v42 = vadd.f32 %v1007_v37, %v899_v38  ;;  %v1028_v44 = vmul.f32 %v1017_v41, %v1017_v41  ;;  %v3336_v37 = vld [vmem:[#allocation8 + $0x88] sm:$0xff]   ;;  %v3338_v39 = vld [vmem:[#allocation8 + $0x80] sm:$0xff]  }
 0x1c9   : > { %v3337_v38 = vld [vmem:[#allocation8 + $0xc8] sm:$0xff]   ;;  %v3339_v40 = vld [vmem:[#allocation8 + $0xc0] sm:$0xff]  }
 0x1ca   : > { %v1018_v43 = vadd.f32 %v1016_v32, %v1012_v42  ;;  %v3334_v32 = vld [vmem:[#allocation8 + $0x90] sm:$0xff]  }
 0x1cc   : > { %v1019_v45 = vadd.f32 %v1018_v43, %v1017_v41  ;;  %v1029_v46 = vmul.f32 %v1018_v43, %v1018_v43 }
 0x1ce   : > { %v1020_v47 = vrot.slane %v1019_v45, 4  ;;  %v1030_v48 = vadd.f32 %v1029_v46, %v1028_v44  ;;  %v3341_v46 = vld [vmem:[%s4022_s4 + $0x38] sm:$0xff]  }
 0x1d0   : > { %v1021_v49 = vadd.f32 %v1020_v47, %v1019_v45  ;;  %v1031_v50 = vrot.slane %v1030_v48, 4  ;;  %v3340_v45 = vld [vmem:[%s4022_s4 + $0x78] sm:$0xff]   ;;  %v3342_v47 = vld [vmem:[%s4022_s4 + $0x70] sm:$0xff]  }
 0x1d2   : > { %v1022_v51 = vrot.slane %v1021_v49, 2  ;;  %v1032_v52 = vadd.f32 %v1031_v50, %v1030_v48  ;;  %v3343_v48 = vld [vmem:[%s4022_s4 + $0x30] sm:$0xff]   ;;  %v3345_v50 = vld [vmem:[%s4022_s4 + $0x28] sm:$0xff]  }
 0x1d4   : > { %v1023_v53 = vadd.f32 %v1022_v51, %v1021_v49  ;;  %v1033_v54 = vrot.slane %v1032_v52, 2  ;;  %v3344_v49 = vld [vmem:[%s4022_s4 + $0x68] sm:$0xff]   ;;  %v3346_v51 = vld [vmem:[%s4022_s4 + $0x60] sm:$0xff]  }
 0x1d6   : > { %v1024_v55 = vrot.slane %v1023_v53, 1  ;;  %v1034_v56 = vadd.f32 %v1033_v54, %v1032_v52  ;;  %v3347_v52 = vld [vmem:[%s4022_s4 + $0x20] sm:$0xff]   ;;  %v3349_v54 = vld [vmem:[%s4022_s4 + $0x18] sm:$0xff]  }
 0x1d8   : > { %v1025_v57 = vadd.f32 %v1024_v55, %v1023_v53  ;;  %v1035_v58 = vrot.slane %v1034_v56, 1  ;;  %v3348_v53 = vld [vmem:[%s4022_s4 + $0x58] sm:$0xff]   ;;  %v3350_v55 = vld [vmem:[%s4022_s4 + $0x50] sm:$0xff]  }
 0x1da   : > { %v1027_v59 = vmul.f32 0.0625, %v1025_v57  ;;  %v1036_v60 = vadd.f32 %v1035_v58, %v1034_v56  ;;  %v3351_v56 = vld [vmem:[%s4022_s4 + $0x10] sm:$0xff]   ;;  %v3352_v57 = vld [vmem:[%s4022_s4 + $0x48] sm:$0xff]  }
 0x1db   : > { %v3353_v58 = vld [vmem:[%s4022_s4 + $0x8] sm:$0xff]  }
 0x1dc   : > { %v1037_v61 = vmul.f32 0.0625, %v1036_v60  ;;  %v1038_v62 = vmul.f32 %v1027_v59, %v1027_v59  ;;  %v1041_v3 = vsub.f32 %v1017_v41, %v1027_v59  ;;  %v1042_v4 = vsub.f32 %v1018_v43, %v1027_v59  ;;  %v3354_v59 = vld [vmem:[%s4022_s4 + $0x40] sm:$0xff]  }
 0x1dd   : > { %v3355_v60 = vld [vmem:[%s4022_s4] sm:$0xff]  }
 0x1de   : > { %v1039_v63 = vsub.f32 %v1037_v61, %v1038_v62 }
 0x1e0   : > { %v1040_v0 = vmax.f32 %v1039_v63, 0.0 }
 0x1e2   : > { %v1043_v1 = vadd.f32 1e-05, %v1040_v0 }
 0x1e4   : > { %3404 = vrsqrt.f32 %v1043_v1 }
 0x1f1   : > { %v3405_v5 = vpop.eup %3404 }
 0x1f2   : > { %v1045_v7 = vmul.f32 %v3405_v5, %v1041_v3  ;;  %v1046_v8 = vmul.f32 %v3405_v5, %v1042_v4  ;;  %v1067_v5 = vld [vmem:[%s4026_s8] sm:$0x7] }
 0x1f4   : > { %v1051_v10 = vmul.f32 %v1050_v2, %v1045_v7  ;;  %v1052_v11 = vmul.f32 %v1050_v2, %v1046_v8 }
 0x1f6   : > { %v1057_v12 = vadd.f32 %v1056_v6, %v1051_v10  ;;  %v1058_v13 = vadd.f32 %v1056_v6, %v1052_v11  ;;  %v1503_v11 = vrot.slane %v1067_v5, %v3645_v34 }
 0x1f8   : > { %vm1059_vm5 = vcmp.ge.f32.partialorder %v1057_v12, 0.0  ;;  %vm1060_vm6 = vcmp.ge.f32.partialorder %v1058_v13, 0.0  ;;  %v1061_v14 = vmul.f32 0.2, %v1057_v12  ;;  %v1062_v15 = vmul.f32 0.2, %v1058_v13 }
 0x1fa   : > { %v1063_v16 = vsel %vm1059_vm5, %v1057_v12, %v1061_v14  ;;  %v1064_v17 = vsel %vm1060_vm6, %v1058_v13, %v1062_v15 }
 0x1fb   : > { %1065 = vst [vmem:[#allocation3 + $0x1] sm:$0xff] %v1063_v16  ;;  %1066 = vst [vmem:[#allocation3 + $0x9] sm:$0xff] %v1064_v17 }
 0x202   : > { %v1087_v19 = vld [vmem:[#allocation3 + $0x1] ss:$2 sm:$0xff]  ;;  %v1068_v20 = vld [vmem:[#allocation3] ss:$2 sm:$0xff] }
 0x203   : > { %v1088_v22 = vpack.c.bf16 %v1087_v19, %v1087_v19  ;;  %v1069_v23 = vpack.c.bf16 %v1068_v20, %v1068_v20  ;;  %v1283_v41 = vld [vmem:[#allocation3 + $0x2] ss:$2 sm:$0xff]  ;;  %v1392_v42 = vld [vmem:[#allocation3 + $0x3] ss:$2 sm:$0xff] }
 0x204   : > { %v1284_v43 = vpack.c.bf16 %v1283_v41, %v1283_v41  ;;  %v1393_v44 = vpack.c.bf16 %v1392_v42, %v1392_v42 }
 0x205   : > { %3008 = vmatmul.mubr.bf16.vlgmr.msra.gmra.mxu0 %v1088_v22  ;;  %3028 = vmatmul.mubr.bf16.vlgmr.msra.gmra.mxu1 %v1069_v23 }
 0x206   : > { %3032 = vmatpush3.bf16.msra.mxu0 %v3324_v18  ;;  %3052 = vmatpush3.bf16.msra.mxu1 %v3325_v21 }
 0x207   : > { %3033 = vmatprep.subr.bf16.mxu0 %v3485_v9  ;;  %3053 = vmatprep.subr.bf16.mxu1 %v3485_v9 }
 0x208   : > { %3047 = vmatprep.mubr.msk.bf16.mxu0 %vm3487_vm0, %v3485_v9  ;;  %3067 = vmatprep.mubr.msk.bf16.mxu1 %vm3487_vm0, %v3485_v9 }
 0x20a   : > { %3034 = vmatpush3.bf16.msra.mxu0 %v3326_v24  ;;  %3054 = vmatpush3.bf16.msra.mxu1 %v3327_v25 }
 0x20b   : > { %3035 = vmatprep.subr.bf16.mxu0 %v3485_v9  ;;  %3055 = vmatprep.subr.bf16.mxu1 %v3485_v9 }
 0x20e   : > { %3036 = vmatpush3.bf16.msra.mxu0 %v3328_v26  ;;  %3056 = vmatpush3.bf16.msra.mxu1 %v3329_v27 }
 0x20f   : > { %3037 = vmatprep.subr.bf16.mxu0 %v3485_v9  ;;  %3057 = vmatprep.subr.bf16.mxu1 %v3485_v9 }
 0x212   : > { %3038 = vmatpush3.bf16.msra.mxu0 %v3330_v28  ;;  %3058 = vmatpush3.bf16.msra.mxu1 %v3331_v29 }
 0x213   : > { %3039 = vmatprep.subr.bf16.mxu0 %v3485_v9  ;;  %3059 = vmatprep.subr.bf16.mxu1 %v3485_v9 }
 0x216   : > { %3040 = vmatpush3.bf16.msra.mxu0 %v3332_v30  ;;  %3060 = vmatpush3.bf16.msra.mxu1 %v3333_v31 }
 0x217   : > { %3041 = vmatprep.subr.bf16.mxu0 %v3485_v9  ;;  %3061 = vmatprep.subr.bf16.mxu1 %v3485_v9 }
 0x21a   : > { %3042 = vmatpush3.bf16.msra.mxu0 %v3334_v32  ;;  %3062 = vmatpush3.bf16.msra.mxu1 %v3335_v36 }
 0x21b   : > { %3043 = vmatprep.subr.bf16.mxu0 %v3485_v9  ;;  %3063 = vmatprep.subr.bf16.mxu1 %v3485_v9 }
 0x21e   : > { %3044 = vmatpush3.bf16.msra.mxu0 %v3336_v37  ;;  %3064 = vmatpush3.bf16.msra.mxu1 %v3337_v38 }
 0x21f   : > { %3045 = vmatprep.subr.bf16.mxu0 %v3485_v9  ;;  %3065 = vmatprep.subr.bf16.mxu1 %v3485_v9 }
 0x222   : > { %3046 = vmatpush3.bf16.msra.mxu0 %v3338_v39  ;;  %3066 = vmatpush3.bf16.msra.mxu1 %v3339_v40 }
 0x223   : > { %3071 = vmatprep.subr.bf16.mxu0 %v3485_v9  ;;  %3091 = vmatprep.subr.bf16.mxu1 %v3485_v9 }
 0x225   : > { %3048 = vmatmul.mubr.bf16.vlgmr.msra.gmra.mxu0 %v1284_v43  ;;  %3068 = vmatmul.mubr.bf16.vlgmr.msra.gmra.mxu1 %v1393_v44  ;;  %v1531_v43 = vrot.slane %v1067_v5, %v3643_v33 }
 0x226   : > { %3087 = vmatprep.mubr.msk.bf16.mxu0 %vm3487_vm0, %v3485_v9  ;;  %3107 = vmatprep.mubr.msk.bf16.mxu1 %vm3487_vm0, %v3485_v9 }
 0x227   : > { %3072 = vmatpush3.bf16.msra.mxu0 %v3340_v45  ;;  %3092 = vmatpush3.bf16.msra.mxu1 %v3341_v46  ;;  %v1536_v46 = vrot.slane %v1067_v5, %v3647_v35  ;;  %v3370_v5 = vld [vmem:[%s4022_s4 + $0x80] sm:$0xff]  }
 0x228   : > { %3073 = vmatprep.subr.bf16.mxu0 %v3485_v9  ;;  %3093 = vmatprep.subr.bf16.mxu1 %v3485_v9 }
 0x22b   : > { %3074 = vmatpush3.bf16.msra.mxu0 %v3342_v47  ;;  %3094 = vmatpush3.bf16.msra.mxu1 %v3343_v48 }
 0x22c   : > { %3075 = vmatprep.subr.bf16.mxu0 %v3485_v9  ;;  %3095 = vmatprep.subr.bf16.mxu1 %v3485_v9 }
 0x22f   : > { %3076 = vmatpush3.bf16.msra.mxu0 %v3344_v49  ;;  %3096 = vmatpush3.bf16.msra.mxu1 %v3345_v50 }
 0x230   : > { %3077 = vmatprep.subr.bf16.mxu0 %v3485_v9  ;;  %3097 = vmatprep.subr.bf16.mxu1 %v3485_v9 }
 0x233   : > { %3078 = vmatpush3.bf16.msra.mxu0 %v3346_v51  ;;  %3098 = vmatpush3.bf16.msra.mxu1 %v3347_v52  ;;  %v3356_v51 = vld [vmem:[%s4022_s4 + $0xb8] sm:$0xff]  }
 0x234   : > { %3079 = vmatprep.subr.bf16.mxu0 %v3485_v9  ;;  %3099 = vmatprep.subr.bf16.mxu1 %v3485_v9 }
 0x237   : > { %3080 = vmatpush3.bf16.msra.mxu0 %v3348_v53  ;;  %3100 = vmatpush3.bf16.msra.mxu1 %v3349_v54  ;;  %v3357_v54 = vld [vmem:[%s4022_s4 + $0xf8] sm:$0xff]  }
 0x238   : > { %3081 = vmatprep.subr.bf16.mxu0 %v3485_v9  ;;  %3101 = vmatprep.subr.bf16.mxu1 %v3485_v9 }
 0x23b   : > { %3082 = vmatpush3.bf16.msra.mxu0 %v3350_v55  ;;  %3102 = vmatpush3.bf16.msra.mxu1 %v3351_v56 }
 0x23c   : > { %3083 = vmatprep.subr.bf16.mxu0 %v3485_v9  ;;  %3103 = vmatprep.subr.bf16.mxu1 %v3485_v9 }
 0x23f   : > { %3084 = vmatpush3.bf16.msra.mxu0 %v3352_v57  ;;  %3104 = vmatpush3.bf16.msra.mxu1 %v3353_v58  ;;  %v3358_v57 = vld [vmem:[%s4022_s4 + $0xb0] sm:$0xff]  }
 0x240   : > { %3085 = vmatprep.subr.bf16.mxu0 %v3485_v9  ;;  %3105 = vmatprep.subr.bf16.mxu1 %v3485_v9  ;;  %v3359_v58 = vld [vmem:[%s4022_s4 + $0xf0] sm:$0xff]  }
 0x243   : > { %3086 = vmatpush3.bf16.msra.mxu0 %v3354_v59  ;;  %3106 = vmatpush3.bf16.msra.mxu1 %v3355_v60  ;;  %v3360_v59 = vld [vmem:[%s4022_s4 + $0xa8] sm:$0xff]  }
 0x244   : > { %3111 = vmatprep.subr.bf16.mxu0 %v3485_v9  ;;  %3131 = vmatprep.subr.bf16.mxu1 %v3485_v9  ;;  %v3361_v60 = vld [vmem:[%s4022_s4 + $0xe8] sm:$0xff]  }
 0x2c5   : > { %v1188_v61 = vpop.f32.mrf.mxu0  ;;  %v1276_v62 = vpop.f32.mrf.mxu1 }
 0x2c6   : > { %v1277_v6 = vadd.f32 %v1276_v62, %v1188_v61  ;;  %v3362_v61 = vld [vmem:[%s4022_s4 + $0xa0] sm:$0xff]  }
 0x2c7   : > { %v3009_v63 = vpop.f32.mrf.mxu0  ;;  %v3029_v0 = vpop.f32.mrf.mxu1  ;;  %v3363_v62 = vld [vmem:[%s4022_s4 + $0xe0] sm:$0xff]  }
 0x2c8   : > { %v3364_v63 = vld [vmem:[%s4022_s4 + $0x98] sm:$0xff]  }
 0x2c9   : > { %v1191_v1 = vpop.f32.mrf.mxu0  ;;  %v1279_v2 = vpop.f32.mrf.mxu1  ;;  %v3365_v0 = vld [vmem:[%s4022_s4 + $0xd8] sm:$0xff]  }
 0x2ca   : > { %v3366_v1 = vld [vmem:[%s4022_s4 + $0x90] sm:$0xff]  }
 0x2cb   : > { %v3010_v3 = vpop.f32.mrf.mxu0  ;;  %v3030_v4 = vpop.f32.mrf.mxu1  ;;  %v3367_v2 = vld [vmem:[%s4022_s4 + $0xd0] sm:$0xff]  }
 0x2cc   : > { %v3368_v3 = vld [vmem:[%s4022_s4 + $0x88] sm:$0xff]  }
 0x2cd   : > { %v3369_v4 = vld [vmem:[%s4022_s4 + $0xc8] sm:$0xff]  }
 0x2e5   : > { %v1384_v7 = vpop.f32.mrf.mxu0  ;;  %v1493_v8 = vpop.f32.mrf.mxu1 }
 0x2e6   : > { %v1390_v10 = vadd.f32 %v1384_v7, %v1277_v6  ;;  %v3371_v6 = vld [vmem:[%s4022_s4 + $0xc0] sm:$0xff]  }
 0x2e7   : > { %v3049_v12 = vpop.f32.mrf.mxu0  ;;  %v3069_v13 = vpop.f32.mrf.mxu1 }
 0x2e8   : > { %v1499_v14 = vadd.f32 %v1493_v8, %v1390_v10  ;;  %v3372_v12 = vld [vmem:[%s4023_s5 + $0x78] sm:$0xff]  }
 0x2e9   : > { %v1387_v15 = vpop.f32.mrf.mxu0  ;;  %v1496_v16 = vpop.f32.mrf.mxu1  ;;  %v3373_v13 = vld [vmem:[%s4023_s5 + $0x38] sm:$0xff]  }
 0x2ea   : > { %v1504_v17 = vadd.f32 %v1503_v11, %v1499_v14  ;;  %v3374_v14 = vld [vmem:[%s4023_s5 + $0x70] sm:$0xff]   ;;  %v3376_v16 = vld [vmem:[%s4023_s5 + $0x68] sm:$0xff]  }
 0x2eb   : > { %v3050_v18 = vpop.f32.mrf.mxu0  ;;  %v3070_v19 = vpop.f32.mrf.mxu1  ;;  %v3375_v15 = vld [vmem:[%s4023_s5 + $0x30] sm:$0xff]  }
 0x2ec   : > { %v1505_v20 = vrot.slane %v1504_v17, 4  ;;  %v1513_v21 = vmul.f32 %v1504_v17, %v1504_v17  ;;  %v3378_v18 = vld [vmem:[%s4023_s5 + $0x60] sm:$0xff]  }
 0x2ed   : > { %v3379_v19 = vld [vmem:[%s4023_s5 + $0x20] sm:$0xff]  }
 0x2ee   : > { %v1506_v22 = vadd.f32 %v1505_v20, %v1504_v17  ;;  %v1514_v23 = vrot.slane %v1513_v21, 4  ;;  %v3380_v20 = vld [vmem:[%s4023_s5 + $0x58] sm:$0xff]  }
 0x2f0   : > { %v1507_v24 = vrot.slane %v1506_v22, 2  ;;  %v1515_v25 = vadd.f32 %v1514_v23, %v1513_v21  ;;  %v3381_v21 = vld [vmem:[%s4023_s5 + $0x18] sm:$0xff]   ;;  %v3383_v23 = vld [vmem:[%s4023_s5 + $0x10] sm:$0xff]  }
 0x2f2   : > { %v1508_v26 = vadd.f32 %v1507_v24, %v1506_v22  ;;  %v1516_v27 = vrot.slane %v1515_v25, 2  ;;  %v3382_v22 = vld [vmem:[%s4023_s5 + $0x50] sm:$0xff]   ;;  %v3384_v24 = vld [vmem:[%s4023_s5 + $0x48] sm:$0xff]  }
 0x2f4   : > { %v1509_v28 = vrot.slane %v1508_v26, 1  ;;  %v1517_v29 = vadd.f32 %v1516_v27, %v1515_v25  ;;  %v3385_v25 = vld [vmem:[%s4023_s5 + $0x8] sm:$0xff]   ;;  %v3387_v27 = vld [vmem:[%s4023_s5] sm:$0xff]  }
 0x2f6   : > { %v1510_v30 = vadd.f32 %v1509_v28, %v1508_v26  ;;  %v1518_v31 = vrot.slane %v1517_v29, 1  ;;  %v3386_v26 = vld [vmem:[%s4023_s5 + $0x40] sm:$0xff]  }
 0x2f8   : > { %v1512_v32 = vmul.f32 0.125, %v1510_v30  ;;  %v1519_v36 = vadd.f32 %v1518_v31, %v1517_v29 }
 0x2fa   : > { %v1520_v37 = vmul.f32 0.125, %v1519_v36  ;;  %v1521_v38 = vmul.f32 %v1512_v32, %v1512_v32  ;;  %v1524_v42 = vsub.f32 %v1504_v17, %v1512_v32  ;;  %v3377_v17 = vld [vmem:[%s4023_s5 + $0x28] sm:$0xff]  }
 0x2fc   : > { %v1522_v39 = vsub.f32 %v1520_v37, %v1521_v38 }
 0x2fe   : > { %v1523_v40 = vmax.f32 %v1522_v39, 0.0  ;;  %v1542_v39 = vld [vmem:[%s4027_s9] sm:$0x7] }
 0x300   : > { %v1525_v41 = vadd.f32 1e-05, %v1523_v40 }
 0x302   : > { %3406 = vrsqrt.f32 %v1525_v41 }
 0x30f   : > { %v3407_v44 = vpop.eup %3406 }
 0x310   : > { %v1527_v45 = vmul.f32 %v3407_v44, %v1524_v42  ;;  %v1975_v44 = vrot.slane %v1542_v39, %v3645_v34 }
 0x312   : > { %v1532_v47 = vmul.f32 %v1531_v43, %v1527_v45 }
 0x314   : > { %v1537_v48 = vadd.f32 %v1536_v46, %v1532_v47 }
 0x316   : > { %vm1538_vm7 = vcmp.ge.f32.partialorder %v1537_v48, 0.0  ;;  %v1539_v49 = vmul.f32 0.2, %v1537_v48 }
 0x318   : > { %v1540_v50 = vsel %vm1538_vm7, %v1537_v48, %v1539_v49 }
 0x319   : > { %1541 = vst [vmem:[#allocation4 + $0x1] sm:$0xff] %v1540_v50 }
 0x320   : > { %v1561_v52 = vld [vmem:[#allocation4 + $0x1] sm:$0x7f] }
 0x321   : > { %v1543_v53 = vld [vmem:[#allocation4] sm:$0x7f]  ;;  %v1562_v55 = vpack.c.bf16 %v1561_v52, %v1561_v52 }
 0x322   : > { %v1544_v56 = vpack.c.bf16 %v1543_v53, %v1543_v53  ;;  %v1756_v7 = vld [vmem:[#allocation4 + $0x2] sm:$0x7f] }
 0x323   : > { %3088 = vmatmul.mubr.bf16.vlgmr.msra.gmra.mxu0 %v1562_v55  ;;  %v1864_v8 = vld [vmem:[#allocation4 + $0x3] sm:$0x7f]  ;;  %v1757_v10 = vpack.c.bf16 %v1756_v7, %v1756_v7 }
 0x324   : > { %3108 = vmatmul.mubr.bf16.vlgmr.msra.gmra.mxu1 %v1544_v56  ;;  %3112 = vmatpush3.bf16.msra.mxu0 %v3356_v51  ;;  %v1865_v11 = vpack.c.bf16 %v1864_v8, %v1864_v8 }
 0x325   : > { %3132 = vmatpush3.bf16.msra.mxu1 %v3357_v54  ;;  %3113 = vmatprep.subr.bf16.mxu0 %v3485_v9 }
 0x326   : > { %3133 = vmatprep.subr.bf16.mxu1 %v3485_v9  ;;  %3127 = vmatprep.mubr.msk.bf16.mxu0 %vm3487_vm0, %v3485_v9 }
 0x327   : > { %3147 = vmatprep.mubr.msk.bf16.mxu1 %vm3487_vm0, %v3485_v9 }
 0x328   : > { %3114 = vmatpush3.bf16.msra.mxu0 %v3358_v57 }
 0x329   : > { %3134 = vmatpush3.bf16.msra.mxu1 %v3359_v58  ;;  %3115 = vmatprep.subr.bf16.mxu0 %v3485_v9 }
 0x32a   : > { %3135 = vmatprep.subr.bf16.mxu1 %v3485_v9 }
 0x32c   : > { %3116 = vmatpush3.bf16.msra.mxu0 %v3360_v59 }
 0x32d   : > { %3136 = vmatpush3.bf16.msra.mxu1 %v3361_v60  ;;  %3117 = vmatprep.subr.bf16.mxu0 %v3485_v9 }
 0x32e   : > { %3137 = vmatprep.subr.bf16.mxu1 %v3485_v9 }
 0x330   : > { %3118 = vmatpush3.bf16.msra.mxu0 %v3362_v61 }
 0x331   : > { %3138 = vmatpush3.bf16.msra.mxu1 %v3363_v62  ;;  %3119 = vmatprep.subr.bf16.mxu0 %v3485_v9 }
 0x332   : > { %3139 = vmatprep.subr.bf16.mxu1 %v3485_v9 }
 0x334   : > { %3120 = vmatpush3.bf16.msra.mxu0 %v3364_v63 }
 0x335   : > { %3140 = vmatpush3.bf16.msra.mxu1 %v3365_v0  ;;  %3121 = vmatprep.subr.bf16.mxu0 %v3485_v9 }
 0x336   : > { %3141 = vmatprep.subr.bf16.mxu1 %v3485_v9 }
 0x338   : > { %3122 = vmatpush3.bf16.msra.mxu0 %v3366_v1 }
 0x339   : > { %3142 = vmatpush3.bf16.msra.mxu1 %v3367_v2  ;;  %3123 = vmatprep.subr.bf16.mxu0 %v3485_v9 }
 0x33a   : > { %3143 = vmatprep.subr.bf16.mxu1 %v3485_v9 }
 0x33c   : > { %3124 = vmatpush3.bf16.msra.mxu0 %v3368_v3 }
 0x33d   : > { %3144 = vmatpush3.bf16.msra.mxu1 %v3369_v4  ;;  %3125 = vmatprep.subr.bf16.mxu0 %v3485_v9 }
 0x33e   : > { %3145 = vmatprep.subr.bf16.mxu1 %v3485_v9 }
 0x340   : > { %3126 = vmatpush3.bf16.msra.mxu0 %v3370_v5 }
 0x341   : > { %3146 = vmatpush3.bf16.msra.mxu1 %v3371_v6  ;;  %3151 = vmatprep.subr.bf16.mxu0 %v3485_v9 }
 0x342   : > { %3171 = vmatprep.subr.bf16.mxu1 %v3485_v9 }
 0x343   : > { %3128 = vmatmul.mubr.bf16.vlgmr.msra.gmra.mxu0 %v1757_v10 }
 0x344   : > { %3148 = vmatmul.mubr.bf16.vlgmr.msra.gmra.mxu1 %v1865_v11  ;;  %3167 = vmatprep.mubr.msk.bf16.mxu0 %vm3487_vm0, %v3485_v9 }
 0x345   : > { %3187 = vmatprep.mubr.msk.bf16.mxu1 %vm3487_vm0, %v3485_v9  ;;  %3152 = vmatpush3.bf16.msra.mxu0 %v3372_v12  ;;  %v2006_v12 = vrot.slane %v1542_v39, %v3643_v33  ;;  %v3389_v33 = vld [vmem:[%s4023_s5 + $0xf8] sm:$0xff]  }
 0x346   : > { %3172 = vmatpush3.bf16.msra.mxu1 %v3373_v13  ;;  %3153 = vmatprep.subr.bf16.mxu0 %v3485_v9 }
 0x347   : > { %3173 = vmatprep.subr.bf16.mxu1 %v3485_v9 }
 0x349   : > { %3154 = vmatpush3.bf16.msra.mxu0 %v3374_v14 }
 0x34a   : > { %3174 = vmatpush3.bf16.msra.mxu1 %v3375_v15  ;;  %3155 = vmatprep.subr.bf16.mxu0 %v3485_v9  ;;  %v2011_v15 = vrot.slane %v1542_v39, %v3647_v35  ;;  %v3390_v35 = vld [vmem:[%s4023_s5 + $0xb0] sm:$0xff]   ;;  %v3402_v39 = vld [vmem:[%s4023_s5 + $0x80] sm:$0xff]  }
 0x34b   : > { %3175 = vmatprep.subr.bf16.mxu1 %v3485_v9 }
 0x34d   : > { %3156 = vmatpush3.bf16.msra.mxu0 %v3376_v16 }
 0x34e   : > { %3176 = vmatpush3.bf16.msra.mxu1 %v3377_v17  ;;  %3157 = vmatprep.subr.bf16.mxu0 %v3485_v9 }
 0x34f   : > { %3177 = vmatprep.subr.bf16.mxu1 %v3485_v9 }
 0x351   : > { %3158 = vmatpush3.bf16.msra.mxu0 %v3378_v18 }
 0x352   : > { %3178 = vmatpush3.bf16.msra.mxu1 %v3379_v19  ;;  %3159 = vmatprep.subr.bf16.mxu0 %v3485_v9 }
 0x353   : > { %3179 = vmatprep.subr.bf16.mxu1 %v3485_v9 }
 0x355   : > { %3160 = vmatpush3.bf16.msra.mxu0 %v3380_v20  ;;  %v3388_v20 = vld [vmem:[%s4023_s5 + $0xb8] sm:$0xff]  }
 0x356   : > { %3180 = vmatpush3.bf16.msra.mxu1 %v3381_v21  ;;  %3161 = vmatprep.subr.bf16.mxu0 %v3485_v9 }
 0x357   : > { %3181 = vmatprep.subr.bf16.mxu1 %v3485_v9 }
 0x359   : > { %3162 = vmatpush3.bf16.msra.mxu0 %v3382_v22 }
 0x35a   : > { %3182 = vmatpush3.bf16.msra.mxu1 %v3383_v23  ;;  %3163 = vmatprep.subr.bf16.mxu0 %v3485_v9 }
 0x35b   : > { %3183 = vmatprep.subr.bf16.mxu1 %v3485_v9 }
 0x35d   : > { %3164 = vmatpush3.bf16.msra.mxu0 %v3384_v24 }
 0x35e   : > { %3184 = vmatpush3.bf16.msra.mxu1 %v3385_v25  ;;  %3165 = vmatprep.subr.bf16.mxu0 %v3485_v9  ;;  %v3391_v25 = vld [vmem:[%s4023_s5 + $0xf0] sm:$0xff]  }
 0x35f   : > { %3185 = vmatprep.subr.bf16.mxu1 %v3485_v9 }
 0x361   : > { %3166 = vmatpush3.bf16.msra.mxu0 %v3386_v26  ;;  %v3392_v26 = vld [vmem:[%s4023_s5 + $0xa8] sm:$0xff]  }
 0x362   : > { %3186 = vmatpush3.bf16.msra.mxu1 %v3387_v27  ;;  %3191 = vmatprep.subr.bf16.mxu0 %v3485_v9  ;;  %v3393_v27 = vld [vmem:[%s4023_s5 + $0xe8] sm:$0xff]  }
 0x363   : > { %3211 = vmatprep.subr.bf16.mxu1 %v3485_v9 }
 0x3e3   : > { %v1662_v28 = vpop.f32.mrf.mxu0 }
 0x3e4   : > { %v1750_v29 = vpop.f32.mrf.mxu1 }
 0x3e5   : > { %v3089_v30 = vpop.f32.mrf.mxu0  ;;  %v1751_v40 = vadd.f32 %v1750_v29, %v1662_v28  ;;  %v3394_v28 = vld [vmem:[%s4023_s5 + $0xa0] sm:$0xff]  }
 0x3e6   : > { %v3109_v31 = vpop.f32.mrf.mxu1  ;;  %v3395_v29 = vld [vmem:[%s4023_s5 + $0xe0] sm:$0xff]   ;;  %v3396_v30 = vld [vmem:[%s4023_s5 + $0x98] sm:$0xff]  }
 0x3e7   : > { %v1665_v32 = vpop.f32.mrf.mxu0  ;;  %v3397_v31 = vld [vmem:[%s4023_s5 + $0xd8] sm:$0xff]  }
 0x3e8   : > { %v1753_v36 = vpop.f32.mrf.mxu1  ;;  %v3398_v32 = vld [vmem:[%s4023_s5 + $0x90] sm:$0xff]  }
 0x3e9   : > { %v3090_v37 = vpop.f32.mrf.mxu0  ;;  %v3399_v36 = vld [vmem:[%s4023_s5 + $0xd0] sm:$0xff]  }
 0x3ea   : > { %v3110_v38 = vpop.f32.mrf.mxu1  ;;  %v3400_v37 = vld [vmem:[%s4023_s5 + $0x88] sm:$0xff]  }
 0x3eb   : > { %v3401_v38 = vld [vmem:[%s4023_s5 + $0xc8] sm:$0xff]  }
 0x403   : > { %v1857_v41 = vpop.f32.mrf.mxu0 }
 0x404   : > { %v1965_v42 = vpop.f32.mrf.mxu1  ;;  %v1863_v43 = vadd.f32 %v1857_v41, %v1751_v40  ;;  %v3403_v40 = vld [vmem:[%s4023_s5 + $0xc0] sm:$0xff]  }
 0x405   : > { %v3129_v45 = vpop.f32.mrf.mxu0 }
 0x406   : > { %v3149_v46 = vpop.f32.mrf.mxu1  ;;  %v1971_v47 = vadd.f32 %v1965_v42, %v1863_v43 }
 0x407   : > { %v1860_v48 = vpop.f32.mrf.mxu0 }
 0x408   : > { %v1968_v49 = vpop.f32.mrf.mxu1  ;;  %v1976_v50 = vadd.f32 %v1975_v44, %v1971_v47 }
 0x409   : > { %v3130_v51 = vpop.f32.mrf.mxu0 }
 0x40a   : > { %v3150_v52 = vpop.f32.mrf.mxu1  ;;  %v1978_v53 = vsel %vm1977_vm8, %v1976_v50, 0.0  ;;  %v1987_v54 = vmul.f32 %v1976_v50, %v1976_v50 }
 0x40b   : > { %v1979_v55 = vrot.slane %v1978_v53, 4 }
 0x40c   : > { %v1988_v56 = vsel %vm1977_vm8, %v1987_v54, 0.0 }
 0x40d   : > { %v1980_v57 = vadd.f32 %v1979_v55, %v1978_v53  ;;  %v1989_v58 = vrot.slane %v1988_v56, 4 }
 0x40f   : > { %v1981_v59 = vrot.slane %v1980_v57, 2  ;;  %v1990_v60 = vadd.f32 %v1989_v58, %v1988_v56 }
 0x411   : > { %v1982_v61 = vadd.f32 %v1981_v59, %v1980_v57  ;;  %v1991_v62 = vrot.slane %v1990_v60, 2 }
 0x413   : > { %v1983_v63 = vrot.slane %v1982_v61, 1  ;;  %v1992_v0 = vadd.f32 %v1991_v62, %v1990_v60 }
 0x415   : > { %v1984_v1 = vadd.f32 %v1983_v63, %v1982_v61  ;;  %v1993_v2 = vrot.slane %v1992_v0, 1 }
 0x417   : > { %v1986_v3 = vmul.f32 0.14285715, %v1984_v1  ;;  %v1994_v4 = vadd.f32 %v1993_v2, %v1992_v0 }
 0x419   : > { %v1995_v5 = vmul.f32 0.14285715, %v1994_v4  ;;  %v1996_v6 = vmul.f32 %v1986_v3, %v1986_v3  ;;  %v1999_v11 = vsub.f32 %v1976_v50, %v1986_v3 }
 0x41b   : > { %v1997_v7 = vsub.f32 %v1995_v5, %v1996_v6 }
 0x41d   : > { %v1998_v8 = vmax.f32 %v1997_v7, 0.0 }
 0x41f   : > { %v2000_v10 = vadd.f32 1e-05, %v1998_v8 }
 0x421   : > { %3408 = vrsqrt.f32 %v2000_v10 }
 0x42e   : > { %v3409_v13 = vpop.eup %3408 }
 0x42f   : > { %v2002_v14 = vmul.f32 %v3409_v13, %v1999_v11 }
 0x431   : > { %v2007_v16 = vmul.f32 %v2006_v12, %v2002_v14 }
 0x433   : > { %v2012_v17 = vadd.f32 %v2011_v15, %v2007_v16 }
 0x435   : > { %vm2013_vm9 = vcmp.ge.f32.partialorder %v2012_v17, 0.0  ;;  %v2014_v18 = vmul.f32 0.2, %v2012_v17 }
 0x437   : > { %v2015_v19 = vsel %vm2013_vm9, %v2012_v17, %v2014_v18 }
 0x438   : > { %2016 = vst [vmem:[#allocation5 + $0x1] sm:$0x7f] %v2015_v19 }
 0x43f   : > { %v2036_v21 = vld [vmem:[#allocation5 + $0x1] sm:$0x3f] }
 0x440   : > { %v2018_v22 = vld [vmem:[#allocation5] sm:$0x3f]  ;;  %v2037_v23 = vpack.c.bf16 %v2036_v21, %v2036_v21 }
 0x441   : > { %v2019_v24 = vpack.c.bf16 %v2018_v22, %v2018_v22  ;;  %v2231_v41 = vld [vmem:[#allocation5 + $0x2] sm:$0x3f] }
 0x442   : > { %3168 = vmatmul.mubr.bf16.vlgmr.msra.gmra.mxu0 %v2037_v23  ;;  %v2339_v42 = vld [vmem:[#allocation5 + $0x3] sm:$0x3f]  ;;  %v2232_v43 = vpack.c.bf16 %v2231_v41, %v2231_v41 }
 0x443   : > { %3188 = vmatmul.mubr.bf16.vlgmr.msra.gmra.mxu1 %v2019_v24  ;;  %3192 = vmatpush3.bf16.msra.mxu0 %v3388_v20  ;;  %v2340_v44 = vpack.c.bf16 %v2339_v42, %v2339_v42 }
 0x444   : > { %3212 = vmatpush3.bf16.msra.mxu1 %v3389_v33  ;;  %3193 = vmatprep.subr.bf16.mxu0 %v3485_v9 }
 0x445   : > { %3213 = vmatprep.subr.bf16.mxu1 %v3485_v9  ;;  %3207 = vmatprep.mubr.msk.bf16.mxu0 %vm3487_vm0, %v3485_v9 }
 0x446   : > { %3227 = vmatprep.mubr.msk.bf16.mxu1 %vm3487_vm0, %v3485_v9 }
 0x447   : > { %3194 = vmatpush3.bf16.msra.mxu0 %v3390_v35 }
 0x448   : > { %3214 = vmatpush3.bf16.msra.mxu1 %v3391_v25  ;;  %3195 = vmatprep.subr.bf16.mxu0 %v3485_v9 }
 0x449   : > { %3215 = vmatprep.subr.bf16.mxu1 %v3485_v9 }
 0x44b   : > { %3196 = vmatpush3.bf16.msra.mxu0 %v3392_v26 }
 0x44c   : > { %3216 = vmatpush3.bf16.msra.mxu1 %v3393_v27  ;;  %3197 = vmatprep.subr.bf16.mxu0 %v3485_v9 }
 0x44d   : > { %3217 = vmatprep.subr.bf16.mxu1 %v3485_v9 }
 0x44f   : > { %3198 = vmatpush3.bf16.msra.mxu0 %v3394_v28 }
 0x450   : > { %3218 = vmatpush3.bf16.msra.mxu1 %v3395_v29  ;;  %3199 = vmatprep.subr.bf16.mxu0 %v3485_v9 }
 0x451   : > { %3219 = vmatprep.subr.bf16.mxu1 %v3485_v9 }
 0x453   : > { %3200 = vmatpush3.bf16.msra.mxu0 %v3396_v30 }
 0x454   : > { %3220 = vmatpush3.bf16.msra.mxu1 %v3397_v31  ;;  %3201 = vmatprep.subr.bf16.mxu0 %v3485_v9 }
 0x455   : > { %3221 = vmatprep.subr.bf16.mxu1 %v3485_v9 }
 0x457   : > { %3202 = vmatpush3.bf16.msra.mxu0 %v3398_v32 }
 0x458   : > { %3222 = vmatpush3.bf16.msra.mxu1 %v3399_v36  ;;  %3203 = vmatprep.subr.bf16.mxu0 %v3485_v9 }
 0x459   : > { %3223 = vmatprep.subr.bf16.mxu1 %v3485_v9 }
 0x45b   : > { %3204 = vmatpush3.bf16.msra.mxu0 %v3400_v37 }
 0x45c   : > { %3224 = vmatpush3.bf16.msra.mxu1 %v3401_v38  ;;  %3205 = vmatprep.subr.bf16.mxu0 %v3485_v9 }
 0x45d   : > { %3225 = vmatprep.subr.bf16.mxu1 %v3485_v9  ;;  %v2017_v9 = vld [vmem:[%s4028_s10] sm:$0x7] }
 0x45e   : > { %v2450_v57 = vrot.slane %v2017_v9, %v3645_v34 }
 0x45f   : > { %3206 = vmatpush3.bf16.msra.mxu0 %v3402_v39 }
 0x460   : > { %3226 = vmatpush3.bf16.msra.mxu1 %v3403_v40 }
 0x462   : > { %3208 = vmatmul.mubr.bf16.vlgmr.msra.gmra.mxu0 %v2232_v43 }
 0x463   : > { %3228 = vmatmul.mubr.bf16.vlgmr.msra.gmra.mxu1 %v2340_v44 }
 0x502   : > { %v2137_v45 = vpop.f32.mrf.mxu0 }
 0x503   : > { %v2225_v46 = vpop.f32.mrf.mxu1 }
 0x504   : > { %v3169_v47 = vpop.f32.mrf.mxu0  ;;  %v2226_v53 = vadd.f32 %v2225_v46, %v2137_v45 }
 0x505   : > { %v3189_v48 = vpop.f32.mrf.mxu1 }
 0x506   : > { %v2140_v49 = vpop.f32.mrf.mxu0 }
 0x507   : > { %v2228_v50 = vpop.f32.mrf.mxu1 }
 0x508   : > { %v3170_v51 = vpop.f32.mrf.mxu0 }
 0x509   : > { %v3190_v52 = vpop.f32.mrf.mxu1 }
 0x522   : > { %v2332_v54 = vpop.f32.mrf.mxu0 }
 0x523   : > { %v2440_v55 = vpop.f32.mrf.mxu1  ;;  %v2338_v56 = vadd.f32 %v2332_v54, %v2226_v53 }
 0x524   : > { %v3209_v58 = vpop.f32.mrf.mxu0 }
 0x525   : > { %v3229_v59 = vpop.f32.mrf.mxu1  ;;  %v2446_v60 = vadd.f32 %v2440_v55, %v2338_v56 }
 0x526   : > { %v2335_v61 = vpop.f32.mrf.mxu0 }
 0x527   : > { %v2443_v62 = vpop.f32.mrf.mxu1  ;;  %v2451_v63 = vadd.f32 %v2450_v57, %v2446_v60 }
 0x528   : > { %v3210_v0 = vpop.f32.mrf.mxu0 }
 0x529   : > { %v3230_v1 = vpop.f32.mrf.mxu1  ;;  %2452 = vst [vmem:[%s414_s27] sm:$0x3f] %v2451_v63 }
 0x52a PF: > { %s23_s17 = sadd.s32 1, %s3476_s17  }
 0x52b   : > { %p20_p2 = scmp.ge.s32.totalorder %s23_s17, 4  }
 0x52d   :  { %22 = sbr.rel (!%p20_p2) target bundleno = 2 (0x2), region = 125 }
 0x532   :  { %2472 = vsyncpa [#allocation7], 1 }
 0x533   :  { %2474 = vsyncpa [#allocation7 + $0x1], 1 }
 0x534   :  { %2475 = vsyncpa [#allocation9], 1 }

</bundles_post_ra>
